<compile_context>
chip_gen: v7x
topology: tpu7x:2x2x1
jax: 0.10.0
libtpu: 0.0.40
codegen_flags: <defaults>
</compile_context>

<pallas_src>
import jax
import jax.numpy as jnp
from jax import lax
from jax.experimental import pallas as pl
from jax.experimental.pallas import tpu as pltpu


def _round_up(v, m):
    return (v + m - 1) // m * m


def _vmem_limit_bytes():
    # Derive the scoped-VMEM request from the chip: ~112 MiB on v5e/v6e
    # (128 MiB physical), ~48 MiB on v7x (64 MiB physical).
    cap = 64 * 1024 * 1024  # conservative fallback
    try:
        cap = int(pltpu.get_tpu_info().vmem_capacity_bytes)
    except Exception:
        pass
    return int(min(cap - 16 * 1024 * 1024, 112 * 1024 * 1024))


def _const_spec(shape):
    """BlockSpec for a grid-invariant operand; single-buffered if supported."""
    idx = lambda n, r: (0,) * len(shape)
    try:
        return pl.BlockSpec(shape, idx, pipeline_mode=pl.Buffered(1))
    except Exception:
        return pl.BlockSpec(shape, idx)


# ---------------------------------------------------------------------------
# Wrapper: layout / padding glue + pallas_call (kernel closes over the static
# tile constants).
# ---------------------------------------------------------------------------
def rpn_forward(x_nchw, params, n_anchor, feat_stride=16, tile_h=None):
    N, Cin, H, W = x_nchw.shape
    Cmid = params["w1"].shape[-1]
    A = n_anchor
    LANE = 128
    SUB = 16                                   # bf16 sublane tile

    CP = _round_up(Cin, LANE)                  # padded input channels (conv K / 3)
    MP = _round_up(Cmid, LANE)                 # padded mid channels   (conv N / head K)
    PHEAD = _round_up(7 * A, LANE)             # [loc(4A)|bg(A)|fg(A)|bg-fg(A)|pad]

    # Row tile: default H/2 keeps >=2 grid steps per image (feeds both v7x
    # TensorCores), cuts halo duplication to ~2/TH, and stays well inside the
    # per-generation VMEM budget at production Cin/Cmid (~30 MB at TH=32,
    # W=64, C=512 with single-buffered weights).
    if tile_h is None:
        tile_h = H // 2 if (H % 2 == 0 and H >= 2) else H
    TH = tile_h
    assert H % TH == 0, "tile_h must divide H"
    R = H // TH

    WS = _round_up(W + 2, SUB)                 # aligned flattened row stride
    PIX_SH = (TH + 2) * WS                     # rows of the concat scratch (mult of 16)
    PIX_IN = (TH + 3) * WS                     # rows of one input tile (>= PIX_SH + 2)
    M_OUT = TH * WS                            # output rows per tile (junk cols >= W)

    f32, bf16 = jnp.float32, jnp.bfloat16

    # ---- activations: bf16 first, NCHW -> NHWC, one fused pad, one gather ----
    x = jnp.transpose(x_nchw.astype(bf16), (0, 2, 3, 1))            # (N,H,W,Cin) bf16
    xp = jnp.pad(x, ((0, 0), (1, 1), (1, WS - (W + 1)), (0, CP - Cin)))  # (N,H+2,WS,CP)
    row_idx = jnp.minimum(
        jnp.arange(R, dtype=jnp.int32)[:, None] * TH
        + jnp.arange(TH + 3, dtype=jnp.int32)[None, :], H + 1)      # (R, TH+3)
    x_tiles = xp[:, row_idx].reshape(N, R, PIX_IN, CP)              # (N,R,PIX_IN,CP)

    # ---- weights: conv as 3 dy-taps with dx folded into K; fused heads ------
    w1 = jnp.pad(params["w1"], ((0, 0), (0, 0), (0, CP - Cin), (0, MP - Cmid)))
    w1 = w1.reshape(3, 3 * CP, MP).astype(bf16)                     # (dy, dx*CP, MP)
    b1 = jnp.pad(params["b1"], ((0, 0), (0, MP - Cmid))).astype(f32)

    wloc, bloc = params["wloc"], params["bloc"]                     # (Cmid,4A),(1,4A)
    wsc, bsc = params["wsc"], params["bsc"]                         # (Cmid,2A),(1,2A)
    wbg, wfg = wsc[:, 0::2], wsc[:, 1::2]
    bbg, bfg = bsc[:, 0::2], bsc[:, 1::2]
    wh = jnp.zeros((MP, PHEAD), f32)
    wh = wh.at[:Cmid, 0:4 * A].set(wloc)
    wh = wh.at[:Cmid, 4 * A:5 * A].set(wbg)
    wh = wh.at[:Cmid, 5 * A:6 * A].set(wfg)
    wh = wh.at[:Cmid, 6 * A:7 * A].set(wbg - wfg)   # sigmoid argument (bg - fg) via MXU
    wh = wh.astype(bf16)
    bh = jnp.zeros((1, PHEAD), f32)
    bh = bh.at[:, 0:4 * A].set(bloc)
    bh = bh.at[:, 4 * A:5 * A].set(bbg)
    bh = bh.at[:, 5 * A:6 * A].set(bfg)
    bh = bh.at[:, 6 * A:7 * A].set(bbg - bfg)

    # -----------------------------------------------------------------------
    # Kernel: one (TH x W) spatial tile of one image per grid step.
    # -----------------------------------------------------------------------
    def kernel(x_ref, w1_ref, b1_ref, wh_ref, bh_ref, out_ref, xc_ref, acc_ref):
        # Hoisted dx shifts: build [x | x<<1 | x<<2] once (2 sublane-shifted
        # copies), reused by all three dy taps.  Lane offsets are 128-aligned.
        xc_ref[:, 0:CP] = x_ref[0:PIX_SH, :]
        xc_ref[:, CP:2 * CP] = x_ref[1:1 + PIX_SH, :]
        xc_ref[:, 2 * CP:3 * CP] = x_ref[2:2 + PIX_SH, :]

        # 3x3 conv = 3 MXU matmuls with K = 3*CP, accumulated in-place in an
        # f32 VMEM scratch (MRB-friendly on v7x).  Row starts dy*WS are
        # multiples of 16 -> sublane aligned, no re-layout copies.
        acc_ref[...] = jnp.dot(xc_ref[0:M_OUT, :], w1_ref[0],
                               preferred_element_type=jnp.float32)
        for dy in (1, 2):
            base = dy * WS
            acc_ref[...] += jnp.dot(xc_ref[base:base + M_OUT, :], w1_ref[dy],
                                    preferred_element_type=jnp.float32)

        h = jnp.maximum(acc_ref[...] + b1_ref[...], 0.0).astype(jnp.bfloat16)

        # Fused 128-lane head: [loc(4A) | bg(A) | fg(A) | (bg-fg)(A) | pad].
        head = jnp.dot(h, wh_ref[...],
                       preferred_element_type=jnp.float32) + bh_ref[...]

        # Per-anchor softmax fg prob = 1/(1+exp(bg-fg)); the argument already
        # sits in lanes [6A,7A), so select in-register -> one unmasked store.
        prob = pl.reciprocal(1.0 + jnp.exp(head), approx=True)
        lane = lax.broadcasted_iota(jnp.int32, head.shape, 1)
        fg_lane = (lane >= 6 * A) & (lane < 7 * A)
        out_ref[...] = jnp.where(fg_lane, prob, head).astype(out_ref.dtype)

    grid_spec = pltpu.PrefetchScalarGridSpec(
        num_scalar_prefetch=0,
        grid=(N, R),
        in_specs=[
            pl.BlockSpec((pl.Squeezed(), pl.Squeezed(), PIX_IN, CP),
                         lambda n, r: (n, r, 0, 0)),
            _const_spec((3, 3 * CP, MP)),
            _const_spec((1, MP)),
            _const_spec((MP, PHEAD)),
            _const_spec((1, PHEAD)),
        ],
        out_specs=pl.BlockSpec((pl.Squeezed(), pl.Squeezed(), M_OUT, PHEAD),
                               lambda n, r: (n, r, 0, 0)),
        scratch_shapes=[
            pltpu.VMEM((PIX_SH, 3 * CP), bf16),      # [x | x<<1 | x<<2]
            pltpu.VMEM((M_OUT, MP), jnp.float32),    # conv accumulator
        ],
    )

    out = pl.pallas_call(
        kernel,
        out_shape=jax.ShapeDtypeStruct((N, R, M_OUT, PHEAD), f32),
        grid_spec=grid_spec,
        compiler_params=pltpu.CompilerParams(
            dimension_semantics=("parallel", "parallel"),
            vmem_limit_bytes=_vmem_limit_bytes()),
    )(x_tiles, w1, b1, wh, bh)

    # Strip junk columns (>= W) and pad lanes; restore PyTorch channel order.
    slab = out.reshape(N, R, TH, WS, PHEAD)[:, :, :, :W, :]
    slab = slab.reshape(N, H * W, PHEAD)
    rpn_locs = slab[:, :, :4 * A].reshape(N, H * W * A, 4)
    s_bg = slab[:, :, 4 * A:5 * A]
    s_fg = slab[:, :, 5 * A:6 * A]
    rpn_scores = jnp.stack([s_bg, s_fg], axis=-1).reshape(N, H * W * A, 2)
    rpn_fg_scores = slab[:, :, 6 * A:7 * A].reshape(N, H * W * A)

    anchors = enumerate_shifted_anchor(params["anchor_base"], feat_stride, H, W)

    # TODO(synk): ProposalCreator (score sort + NMS), SampleTargetProposal and
    # SampleTargetAnchor are data-dependent sorting / suppression with no clean
    # Pallas equivalent; only the dense RPN head is implemented here.
    return rpn_locs, rpn_scores, rpn_fg_scores, anchors


# ---------------------------------------------------------------------------
# Anchor glue (plain JAX, matches chainer/simple-faster-rcnn conventions).
# ---------------------------------------------------------------------------
def generate_anchor_base(base_size, ratios, scales):
    py = px = base_size / 2.0
    rows = []
    for r in ratios:
        for s in scales:
            h = base_size * s * (r ** 0.5)
            w = base_size * s * ((1.0 / r) ** 0.5)
            rows.append([py - h / 2.0, px - w / 2.0, py + h / 2.0, px + w / 2.0])
    return jnp.asarray(rows, jnp.float32)


def enumerate_shifted_anchor(anchor_base, feat_stride, H, W):
    shift_y = jnp.arange(0, H * feat_stride, feat_stride, dtype=jnp.float32)
    shift_x = jnp.arange(0, W * feat_stride, feat_stride, dtype=jnp.float32)
    sx, sy = jnp.meshgrid(shift_x, shift_y)
    shift = jnp.stack((sy.ravel(), sx.ravel(), sy.ravel(), sx.ravel()), axis=1)
    anchor = anchor_base[None, :, :] + shift[:, None, :]
    return anchor.reshape(-1, 4)


# ---------------------------------------------------------------------------
# Deterministic parameter init (Gaussian * 0.01, like normal_init in the repo).
# ---------------------------------------------------------------------------
def init_params(key, in_channels, mid_channels, n_anchor, scales, ratios):
    ks = jax.random.split(key, 6)
    A = n_anchor
    return {
        "w1": 0.01 * jax.random.normal(ks[0], (3, 3, in_channels, mid_channels), jnp.float32),
        "b1": 0.01 * jax.random.normal(ks[1], (1, mid_channels), jnp.float32),
        "wloc": 0.01 * jax.random.normal(ks[2], (mid_channels, 4 * A), jnp.float32),
        "bloc": 0.01 * jax.random.normal(ks[3], (1, 4 * A), jnp.float32),
        "wsc": 0.01 * jax.random.normal(ks[4], (mid_channels, 2 * A), jnp.float32),
        "bsc": 0.01 * jax.random.normal(ks[5], (1, 2 * A), jnp.float32),
        "anchor_base": generate_anchor_base(16, ratios, scales),
    }


# ---------------------------------------------------------------------------
# Pure-JAX reference of the RPN head (mirrors the kernel's bf16 rounding so
# the comparison isolates real bugs rather than dtype noise).
# ---------------------------------------------------------------------------
def reference_forward(x_nchw, params, n_anchor):
    N, Cin, H, W = x_nchw.shape
    A = n_anchor
    rt = lambda a: a.astype(jnp.bfloat16).astype(jnp.float32)
    x_nhwc = rt(jnp.transpose(x_nchw, (0, 2, 3, 1)))
    h = lax.conv_general_dilated(
        x_nhwc, rt(params["w1"]), (1, 1), "SAME",
        dimension_numbers=("NHWC", "HWIO", "NHWC")) + params["b1"]
    h = rt(jnp.maximum(h, 0.0))
    loc = jnp.einsum("nhwc,cd->nhwd", h, rt(params["wloc"])) + params["bloc"]
    sc = jnp.einsum("nhwc,cd->nhwd", h, rt(params["wsc"])) + params["bsc"]
    fg = jax.nn.softmax(sc.reshape(N, H, W, A, 2), axis=-1)[..., 1]
    return (loc.reshape(N, -1, 4), sc.reshape(N, -1, 2), fg.reshape(N, -1))


if __name__ == "__main__":
    # Small, deterministic shapes consistent with the module's forward.
    N, Cin, H, W = 2, 4, 16, 16
    Cmid = 16
    scales = (8.0, 16.0, 32.0)
    ratios = (0.5, 1.0, 2.0)
    n_anchor = len(scales) * len(ratios)   # 9

    key = jax.random.PRNGKey(0)
    kx, kp = jax.random.split(key)
    x = jax.random.normal(kx, (N, Cin, H, W), jnp.float32)
    params = init_params(kp, Cin, Cmid, n_anchor, scales, ratios)

    rpn_locs, rpn_scores, rpn_fg, anchors = jax.block_until_ready(
        rpn_forward(x, params, n_anchor))

    ref_locs, ref_scores, ref_fg = reference_forward(x, params, n_anchor)
    assert rpn_locs.shape == (N, H * W * n_anchor, 4)
    assert rpn_scores.shape == (N, H * W * n_anchor, 2)
    assert rpn_fg.shape == (N, H * W * n_anchor)
    assert anchors.shape == (H * W * n_anchor, 4)
    assert jnp.allclose(rpn_locs, ref_locs, rtol=1e-3, atol=1e-4)
    assert jnp.allclose(rpn_scores, ref_scores, rtol=1e-3, atol=1e-4)
    assert jnp.allclose(rpn_fg, ref_fg, rtol=1e-2, atol=2e-3)

    print("KERNEL_OK")
</pallas_src>

<mosaic_0001>
module attributes {stable_mosaic.version = 11 : i64} {
  func.func @kernel(%arg0: i32, %arg1: i32, %arg2: memref<1x1x352x128xbf16, #tpu.memory_space<vmem>>, %arg3: memref<3x384x128xbf16, #tpu.memory_space<vmem>>, %arg4: memref<1x128xf32, #tpu.memory_space<vmem>>, %arg5: memref<128x128xbf16, #tpu.memory_space<vmem>>, %arg6: memref<1x128xf32, #tpu.memory_space<vmem>>, %arg7: memref<1x1x256x128xf32, #tpu.memory_space<vmem>>, %arg8: memref<320x384xbf16, #tpu.memory_space<vmem>>, %arg9: memref<256x128xf32, #tpu.memory_space<vmem>>) attributes {dimension_semantics = [#tpu.dimension_semantics<parallel>, #tpu.dimension_semantics<parallel>], iteration_bounds = array<i64: 2, 2>, scalar_prefetch = 0 : i64, scratch_operands = 2 : i64, tpu.core_type = #tpu.core_type<tc>, window_params = [{transform_indices = @transform_0, window_bounds = array<i64: 1, 1, 352, 128>}, {pipeline_mode = #tpu.pipeline_mode<synchronous>, transform_indices = @transform_1, window_bounds = array<i64: 3, 384, 128>}, {pipeline_mode = #tpu.pipeline_mode<synchronous>, transform_indices = @transform_2, window_bounds = array<i64: 1, 128>}, {pipeline_mode = #tpu.pipeline_mode<synchronous>, transform_indices = @transform_3, window_bounds = array<i64: 128, 128>}, {pipeline_mode = #tpu.pipeline_mode<synchronous>, transform_indices = @transform_4, window_bounds = array<i64: 1, 128>}, {transform_indices = @transform_5, window_bounds = array<i64: 1, 1, 256, 128>}]} {
    %c0 = arith.constant 0 : index
    %c0_0 = arith.constant 0 : index
    %c0_1 = arith.constant 0 : index
    %c0_2 = arith.constant 0 : index
    %0 = vector.load %arg2[%c0, %c0_0, %c0_1, %c0_2] : memref<1x1x352x128xbf16, #tpu.memory_space<vmem>>, vector<1x1x320x128xbf16>
    %1 = vector.shape_cast %0 : vector<1x1x320x128xbf16> to vector<320x128xbf16>
    %c0_3 = arith.constant 0 : index
    %c0_4 = arith.constant 0 : index
    %2 = vector.load %arg8[%c0_3, %c0_4] : memref<320x384xbf16, #tpu.memory_space<vmem>>, vector<320x128xbf16>
    tpu.vector_store %arg8[%c0_3, %c0_4], %1 {strides = array<i32>} : memref<320x384xbf16, #tpu.memory_space<vmem>>, vector<320x128xbf16>,
    %c0_5 = arith.constant 0 : index
    %c0_6 = arith.constant 0 : index
    %c1 = arith.constant 1 : index
    %c0_7 = arith.constant 0 : index
    %3 = vector.load %arg2[%c0_5, %c0_6, %c1, %c0_7] : memref<1x1x352x128xbf16, #tpu.memory_space<vmem>>, vector<1x1x320x128xbf16>
    %4 = vector.shape_cast %3 : vector<1x1x320x128xbf16> to vector<320x128xbf16>
    %c0_8 = arith.constant 0 : index
    %c128 = arith.constant 128 : index
    %5 = vector.load %arg8[%c0_8, %c128] : memref<320x384xbf16, #tpu.memory_space<vmem>>, vector<320x128xbf16>
    tpu.vector_store %arg8[%c0_8, %c128], %4 {strides = array<i32>} : memref<320x384xbf16, #tpu.memory_space<vmem>>, vector<320x128xbf16>,
    %c0_9 = arith.constant 0 : index
    %c0_10 = arith.constant 0 : index
    %c2 = arith.constant 2 : index
    %c0_11 = arith.constant 0 : index
    %6 = vector.load %arg2[%c0_9, %c0_10, %c2, %c0_11] : memref<1x1x352x128xbf16, #tpu.memory_space<vmem>>, vector<1x1x320x128xbf16>
    %7 = vector.shape_cast %6 : vector<1x1x320x128xbf16> to vector<320x128xbf16>
    %c0_12 = arith.constant 0 : index
    %c256 = arith.constant 256 : index
    %8 = vector.load %arg8[%c0_12, %c256] : memref<320x384xbf16, #tpu.memory_space<vmem>>, vector<320x128xbf16>
    tpu.vector_store %arg8[%c0_12, %c256], %7 {strides = array<i32>} : memref<320x384xbf16, #tpu.memory_space<vmem>>, vector<320x128xbf16>,
    %c0_13 = arith.constant 0 : index
    %c0_14 = arith.constant 0 : index
    %9 = vector.load %arg8[%c0_13, %c0_14] : memref<320x384xbf16, #tpu.memory_space<vmem>>, vector<256x384xbf16>
    %c0_15 = arith.constant 0 : index
    %c0_16 = arith.constant 0 : index
    %c0_17 = arith.constant 0 : index
    %10 = vector.load %arg3[%c0_15, %c0_16, %c0_17] : memref<3x384x128xbf16, #tpu.memory_space<vmem>>, vector<1x384x128xbf16>
    %11 = vector.shape_cast %10 : vector<1x384x128xbf16> to vector<384x128xbf16>
    %cst = arith.constant dense<0.000000e+00> : vector<256x128xf32>
    %12 = tpu.matmul %9, %11, %cst {dimension_numbers = #tpu.dot_dimension_numbers<[1], [0], [0], [1], [0, 0, 1, 1], [], []>} : vector<256x384xbf16>, vector<384x128xbf16>, vector<256x128xf32> -> vector<256x128xf32>
    %c0_18 = arith.constant 0 : index
    %c0_19 = arith.constant 0 : index
    %13 = vector.load %arg9[%c0_18, %c0_19] : memref<256x128xf32, #tpu.memory_space<vmem>>, vector<256x128xf32>
    tpu.vector_store %arg9[%c0_18, %c0_19], %12 {strides = array<i32>} : memref<256x128xf32, #tpu.memory_space<vmem>>, vector<256x128xf32>,
    %c0_20 = arith.constant 0 : index
    %c0_21 = arith.constant 0 : index
    %14 = vector.load %arg9[%c0_20, %c0_21] : memref<256x128xf32, #tpu.memory_space<vmem>>, vector<256x128xf32>
    %c32 = arith.constant 32 : index
    %c0_22 = arith.constant 0 : index
    %15 = vector.load %arg8[%c32, %c0_22] : memref<320x384xbf16, #tpu.memory_space<vmem>>, vector<256x384xbf16>
    %c1_23 = arith.constant 1 : index
    %c0_24 = arith.constant 0 : index
    %c0_25 = arith.constant 0 : index
    %16 = vector.load %arg3[%c1_23, %c0_24, %c0_25] : memref<3x384x128xbf16, #tpu.memory_space<vmem>>, vector<1x384x128xbf16>
    %17 = vector.shape_cast %16 : vector<1x384x128xbf16> to vector<384x128xbf16>
    %cst_26 = arith.constant dense<0.000000e+00> : vector<256x128xf32>
    %18 = tpu.matmul %15, %17, %cst_26 {dimension_numbers = #tpu.dot_dimension_numbers<[1], [0], [0], [1], [0, 0, 1, 1], [], []>} : vector<256x384xbf16>, vector<384x128xbf16>, vector<256x128xf32> -> vector<256x128xf32>
    %19 = arith.addf %14, %18 : vector<256x128xf32>
    %c0_27 = arith.constant 0 : index
    %c0_28 = arith.constant 0 : index
    %20 = vector.load %arg9[%c0_27, %c0_28] : memref<256x128xf32, #tpu.memory_space<vmem>>, vector<256x128xf32>
    tpu.vector_store %arg9[%c0_27, %c0_28], %19 {strides = array<i32>} : memref<256x128xf32, #tpu.memory_space<vmem>>, vector<256x128xf32>,
    %c0_29 = arith.constant 0 : index
    %c0_30 = arith.constant 0 : index
    %21 = vector.load %arg9[%c0_29, %c0_30] : memref<256x128xf32, #tpu.memory_space<vmem>>, vector<256x128xf32>
    %c64 = arith.constant 64 : index
    %c0_31 = arith.constant 0 : index
    %22 = vector.load %arg8[%c64, %c0_31] : memref<320x384xbf16, #tpu.memory_space<vmem>>, vector<256x384xbf16>
    %c2_32 = arith.constant 2 : index
    %c0_33 = arith.constant 0 : index
    %c0_34 = arith.constant 0 : index
    %23 = vector.load %arg3[%c2_32, %c0_33, %c0_34] : memref<3x384x128xbf16, #tpu.memory_space<vmem>>, vector<1x384x128xbf16>
    %24 = vector.shape_cast %23 : vector<1x384x128xbf16> to vector<384x128xbf16>
    %cst_35 = arith.constant dense<0.000000e+00> : vector<256x128xf32>
    %25 = tpu.matmul %22, %24, %cst_35 {dimension_numbers = #tpu.dot_dimension_numbers<[1], [0], [0], [1], [0, 0, 1, 1], [], []>} : vector<256x384xbf16>, vector<384x128xbf16>, vector<256x128xf32> -> vector<256x128xf32>
    %26 = arith.addf %21, %25 : vector<256x128xf32>
    %c0_36 = arith.constant 0 : index
    %c0_37 = arith.constant 0 : index
    %27 = vector.load %arg9[%c0_36, %c0_37] : memref<256x128xf32, #tpu.memory_space<vmem>>, vector<256x128xf32>
    tpu.vector_store %arg9[%c0_36, %c0_37], %26 {strides = array<i32>} : memref<256x128xf32, #tpu.memory_space<vmem>>, vector<256x128xf32>,
    %c0_38 = arith.constant 0 : index
    %c0_39 = arith.constant 0 : index
    %28 = vector.load %arg9[%c0_38, %c0_39] : memref<256x128xf32, #tpu.memory_space<vmem>>, vector<256x128xf32>
    %c0_40 = arith.constant 0 : index
    %c0_41 = arith.constant 0 : index
    %29 = vector.load %arg4[%c0_40, %c0_41] : memref<1x128xf32, #tpu.memory_space<vmem>>, vector<1x128xf32>
    %30 = vector.broadcast %29 : vector<1x128xf32> to vector<256x128xf32>
    %31 = arith.addf %28, %30 : vector<256x128xf32>
    %cst_42 = arith.constant 0.000000e+00 : f32
    %32 = vector.broadcast %cst_42 : f32 to vector<256x128xf32>
    %33 = arith.maximumf %31, %32 : vector<256x128xf32>
    %34 = arith.truncf %33 : vector<256x128xf32> to vector<256x128xbf16>
    %c0_43 = arith.constant 0 : index
    %c0_44 = arith.constant 0 : index
    %35 = vector.load %arg5[%c0_43, %c0_44] : memref<128x128xbf16, #tpu.memory_space<vmem>>, vector<128x128xbf16>
    %cst_45 = arith.constant dense<0.000000e+00> : vector<256x128xf32>
    %36 = tpu.matmul %34, %35, %cst_45 {dimension_numbers = #tpu.dot_dimension_numbers<[1], [0], [0], [1], [0, 0, 1, 1], [], []>} : vector<256x128xbf16>, vector<128x128xbf16>, vector<256x128xf32> -> vector<256x128xf32>
    %c0_46 = arith.constant 0 : index
    %c0_47 = arith.constant 0 : index
    %37 = vector.load %arg6[%c0_46, %c0_47] : memref<1x128xf32, #tpu.memory_space<vmem>>, vector<1x128xf32>
    %38 = vector.broadcast %37 : vector<1x128xf32> to vector<256x128xf32>
    %39 = arith.addf %36, %38 : vector<256x128xf32>
    %40 = math.exp %39 : vector<256x128xf32>
    %cst_48 = arith.constant 1.000000e+00 : f32
    %41 = vector.broadcast %cst_48 : f32 to vector<256x128xf32>
    %42 = arith.addf %41, %40 : vector<256x128xf32>
    %43 = tpu.reciprocal %42 {approx = true} : vector<256x128xf32> -> vector<256x128xf32>
    %44 = tpu.iota {dimensions = array<i32: 1>} : vector<256x128xi32>
    %c54_i32 = arith.constant 54 : i32
    %45 = vector.broadcast %c54_i32 : i32 to vector<256x128xi32>
    %46 = arith.cmpi sge, %44, %45 : vector<256x128xi32>
    %c63_i32 = arith.constant 63 : i32
    %47 = vector.broadcast %c63_i32 : i32 to vector<256x128xi32>
    %48 = arith.cmpi slt, %44, %47 : vector<256x128xi32>
    %49 = arith.andi %46, %48 : vector<256x128xi1>
    %50 = arith.select %49, %43, %39 : vector<256x128xi1>, vector<256x128xf32>
    %c0_49 = arith.constant 0 : index
    %c0_50 = arith.constant 0 : index
    %c0_51 = arith.constant 0 : index
    %c0_52 = arith.constant 0 : index
    %51 = vector.load %arg7[%c0_49, %c0_50, %c0_51, %c0_52] : memref<1x1x256x128xf32, #tpu.memory_space<vmem>>, vector<1x1x256x128xf32>
    %52 = vector.shape_cast %51 : vector<1x1x256x128xf32> to vector<256x128xf32>
    %53 = vector.shape_cast %50 : vector<256x128xf32> to vector<1x1x256x128xf32>
    tpu.vector_store %arg7[%c0_49, %c0_50, %c0_51, %c0_52], %53 {strides = array<i32>} : memref<1x1x256x128xf32, #tpu.memory_space<vmem>>, vector<1x1x256x128xf32>,
    return
  }
  func.func @transform_0(%arg0: i32, %arg1: i32) -> (i32, i32, i32, i32) {
    %c0_i32 = arith.constant 0 : i32
    %c0_i32_0 = arith.constant 0 : i32
    %c0_i32_1 = arith.constant 0 : i32
    return %arg0, %arg1, %c0_i32, %c0_i32_0 : i32, i32, i32, i32
  }
  func.func @transform_1(%arg0: i32, %arg1: i32) -> (i32, i32, i32) {
    %c0_i32 = arith.constant 0 : i32
    %c0_i32_0 = arith.constant 0 : i32
    %c0_i32_1 = arith.constant 0 : i32
    %c0_i32_2 = arith.constant 0 : i32
    return %c0_i32, %c0_i32_0, %c0_i32_1 : i32, i32, i32
  }
  func.func @transform_2(%arg0: i32, %arg1: i32) -> (i32, i32) {
    %c0_i32 = arith.constant 0 : i32
    %c0_i32_0 = arith.constant 0 : i32
    %c0_i32_1 = arith.constant 0 : i32
    return %c0_i32, %c0_i32_0 : i32, i32
  }
  func.func @transform_3(%arg0: i32, %arg1: i32) -> (i32, i32) {
    %c0_i32 = arith.constant 0 : i32
    %c0_i32_0 = arith.constant 0 : i32
    %c0_i32_1 = arith.constant 0 : i32
    return %c0_i32, %c0_i32_0 : i32, i32
  }
  func.func @transform_4(%arg0: i32, %arg1: i32) -> (i32, i32) {
    %c0_i32 = arith.constant 0 : i32
    %c0_i32_0 = arith.constant 0 : i32
    %c0_i32_1 = arith.constant 0 : i32
    return %c0_i32, %c0_i32_0 : i32, i32
  }
  func.func @transform_5(%arg0: i32, %arg1: i32) -> (i32, i32, i32, i32) {
    %c0_i32 = arith.constant 0 : i32
    %c0_i32_0 = arith.constant 0 : i32
    %c0_i32_1 = arith.constant 0 : i32
    return %arg0, %arg1, %c0_i32, %c0_i32_0 : i32, i32, i32, i32
  }
}

</mosaic_0001>

<bundles_post_ra>
// kernel: tpu_custom_call.1
= control target key start
LH: loop header
LB: loop body
LE: loop exit
PB: predicated region body
PF: predicated region fallthrough
CT: control target
= control target key end

     0   :  { %s6412_s0 = inlined_call_operand.hbm [shape: bf16[2,2,352,128], index: 0, kind: input, shape index: {}]   ;;  %s6413_s1 = inlined_call_operand.hbm [shape: bf16[3,384,128], index: 1, kind: input, shape index: {}]   ;;  %s6414_s2 = inlined_call_operand.vmem [shape: f32[1,128], index: 2, kind: input, shape index: {}]   ;;  %s6415_s3 = inlined_call_operand.hbm [shape: bf16[128,128], index: 3, kind: input, shape index: {}]   ;;  %s6416_s4 = inlined_call_operand.vmem [shape: f32[1,128], index: 4, kind: input, shape index: {}]   ;;  %s6417_s5 = inlined_call_operand.hbm [shape: f32[2,2,256,128], index: 5, kind: output, shape index: {}]  }
   0x1   :  { %6429 = sst [smem:[#allocation19_spill]] %s6413_s1 }
   0x2   :  { %6430 = sst [smem:[#allocation20_spill]] %s6415_s3 }
   0x3   :  { %10 = vsyncpa [#allocation5], 0 }
   0x4   :  { %12 = vsyncpa [#allocation5 + $0x1], 0 }
   0x5   :  { %13 = vsyncpa [#allocation8], 0 }
   0x6   :  { %14 = vsyncpa [#allocation6], 0 }
   0x7   :  { %16 = vsyncpa [#allocation6 + $0x1], 0  ;;  %s5181_s18 = smov 0   ;;  %s5183_s19 = smov 0  }
   0x8   :  { %s5185_s20 = smov 0   ;;  %s5187_s21 = smov 0  }
   0x9   :  { %s5189_s22 = smov 0   ;;  %s5191_s23 = smov 0  }
   0xa   :  { %s5193_s24 = smov 0   ;;  %s5195_s25 = smov 0  }
   0xb LB: > { %6431 = sst [smem:[#allocation14_spill]] %s5113_s18  ;;  %s3631_s26 = sadd.s32 4294967295, %s5141_s25   ;;  %s5141_s25 = sphi %s5195_s25, %s22_s25   ;;  %s5137_s24 = sphi %s5193_s24, %s6465_s24   ;;  %s5133_s23 = sphi %s5191_s23, %s6459_s23   ;;  %s5129_s22 = sphi %s5189_s22, %s6464_s22   ;;  %s5125_s21 = sphi %s5187_s21, %s6458_s21   ;;  %s5121_s20 = sphi %s5185_s20, %s6463_s20   ;;  %s5117_s19 = sphi %s5183_s19, %s6462_s19   ;;  %s5113_s18 = sphi %s5181_s18, %s6461_s18  }
   0xc   : > { %6432 = sst [smem:[#allocation15_spill]] %s5133_s23  ;;  %s3632_s27 = sadd.s32 4294967294, %s5141_s25  }
   0xd   : > { %p56_p0 = scmp.ne.s32.totalorder %s5117_s19, %s5113_s18  ;;  %p5225_p1 = scmp.eq.s32.totalorder %s3631_s26, 0 }
   0xe   : > { %p5229_p2 = scmp.eq.s32.totalorder %s3631_s26, 3  ;;  %p172_p3 = scmp.eq.s32.totalorder %s3632_s27, 3 }
   0xf   : > { %s6433_s28 = scalar_select %p5225_p1, 1, 0 }
  0x10   : > { %s6434_s29 = scalar_select %p5229_p2, 1, 0 }
  0x11   : > { %p5235_p4 = por %p5225_p1, %p56_p0  ;;  %p3633_p5 = scmp.ge.s32.totalorder %s5141_s25, 1 }
  0x12   : > { %p5240_p6 = por %p172_p3, %p56_p0  ;;  %p179_p7 = scmp.lt.s32.totalorder %s5141_s25, 5 }
  0x13   : > { %s6435_s30 = scalar_select %p5235_p4, 1, 0 }
  0x14   : > { %s6436_s6 = scalar_select %p5240_p6, 1, 0 }
  0x15   : > { %p5245_p8 = pnand %p3633_p5, %p179_p7  ;;  %s5143_s8 = smov [#allocation7]  }
  0x16   : > { %6437 = sst [smem:[#allocation16_spill]] %s6436_s6  ;;  %s191_s9 = sshll.u32 %s5143_s8, 4  ;;  %s192_s9 = int_to_ptr.vmem [resolvable:$true] %s191_s9 }
  0x17   : > { %s6438_s7 = scalar_select %p5245_p8, 1, 0 }
  0x18   : > { %p4592_p9 = pneg %p5245_p8  ;;  %s5144_s11 = smov [#allocation9]  }
  0x19   : > { %s207_s12 = sshll.u32 %s5144_s11, 4  ;;  %s6440_s1 = sld [smem:[#allocation19_spill]]  ;;  %s5257_s12 = int_to_ptr.vmem [resolvable:$true] %s207_s12 }
  0x1a   : > { %p5253_p10 = pnand %p4592_p9, %p5225_p1 }
  0x1c   : > { %p4955_p12 = pneg %p5253_p10 }
  0x1f   : > { %s4953_s15 = scalar_lea.hbm %s6440_s1, 9216 }
  0x20   : > { %p4954_p11 = scmp.ne.s32.totalorder %s6440_s1, %s4953_s15  ;;  %p4960_p3 = scmp.lt.u32.totalorder %s4953_s15, %s6440_s1 }
  0x22   : > { %p4956_p13 = pnand %p4955_p12, %p4954_p11 }
  0x24   : > { %p4957_p0 = pneg %p4956_p13 }
  0x26   : > { %p4962_p5 = pnand %p4960_p3, %p4957_p0 }
  0x28   : > { %4965 = shalt.err (!%p4962_p5)
}
  0x29   : > { %s4966_s8 = scalar_lea.vmem %s192_s9, 9216  ;;  %p4974_p1 = scmp.lt.s32.totalorder %s192_s9, %s192_s9 }
  0x2a   : > { %p4967_p7 = scmp.ne.s32.totalorder %s192_s9, %s4966_s8  ;;  %p4975_p4 = scmp.lt.s32.totalorder %s4966_s8, %s4966_s8 }
  0x2c   : > { %p4969_p9 = pnand %p4967_p7, %p4955_p12  ;;  %p4976_p8 = por %p4975_p4, %p4974_p1 }
  0x2e   : > { %p4970_p6 = pneg %p4969_p9 }
  0x30   : > { %p4977_p2 = pnand %p4976_p8, %p4970_p6 }
  0x32   : > { %4980 = shalt.err (!%p4977_p2)
}
  0x33   : > { %s6424_s11 = smov 64   ;;  %s6425_s13 = smov 4  }
  0x34   : > { %4595 = dma.hbm_to_vmem [thread:$0]  (!%p5253_p10), %s6440_s1, 9216, %s192_s9, [#allocation8], %s6424_s11, %s6424_s11, %s6425_s13  }
  0x35   : > { %s6441_s3 = sld [smem:[#allocation20_spill]] }
  0x3b   : > { %s4981_s26 = scalar_lea.hbm %s6441_s3, 1024 }
  0x3c   : > { %p4982_p1 = scmp.ne.s32.totalorder %s6441_s3, %s4981_s26  ;;  %p4988_p6 = scmp.lt.u32.totalorder %s4981_s26, %s6441_s3 }
  0x3e   : > { %p4984_p2 = pnand %p4982_p1, %p4955_p12 }
  0x40   : > { %p4985_p4 = pneg %p4984_p2 }
  0x42   : > { %p4990_p8 = pnand %p4988_p6, %p4985_p4 }
  0x44   : > { %4993 = shalt.err (!%p4990_p8)
}
  0x45   : > { %s4994_s9 = scalar_lea.vmem %s5257_s12, 1024  ;;  %p5002_p3 = scmp.lt.s32.totalorder %s5257_s12, %s5257_s12 }
  0x46   : > { %p4995_p11 = scmp.ne.s32.totalorder %s5257_s12, %s4994_s9  ;;  %p5003_p5 = scmp.lt.s32.totalorder %s4994_s9, %s4994_s9 }
  0x48   : > { %p4997_p13 = pnand %p4995_p11, %p4955_p12  ;;  %p5004_p7 = por %p5003_p5, %p5002_p3 }
  0x4a   : > { %p4998_p0 = pneg %p4997_p13 }
  0x4c   : > { %p5005_p9 = pnand %p5004_p7, %p4998_p0 }
  0x4e   : > { %5008 = shalt.err (!%p5005_p9)
}
  0x4f   : > { %4598 = dma.hbm_to_vmem [thread:$0]  (!%p5253_p10), %s6441_s3, 1024, %s5257_s12, [#allocation8], %s6424_s11, %s6424_s11, %s6425_s13  }
  0x50   : > { %s31_s10 = sadd.s32 1, %s5133_s23  ;;  %s34_s14 = sadd.s32 1, %s5137_s24 }
  0x51   : > { %p32_p12 = scmp.ge.s32.totalorder %s31_s10, 2  ;;  %s43_s15 = sadd.s32 1, %s5121_s20 }
  0x52   : > { %p50_p1 = scmp.ne.s32.totalorder %s5121_s20, %s5117_s19  ;;  %p51_p2 = scmp.eq.s32.totalorder %s5141_s25, 0 }
  0x53   : > { %s6467_s10 = smov (%p32_p12, %s31_s10), 0  ;;  %s6469_s14 = smov (!%p32_p12, %s34_s14), %s5137_s24 }
  0x54   : > { %6442 = sst [smem:[#allocation17_spill]] %s6467_s10  ;;  %s39_s16 = ssub.s32 %s5133_s23, %s6467_s10 }
  0x55   : > { %p5323_p4 = por %p51_p2, %p50_p1  ;;  %p36_p10 = scmp.ge.s32.totalorder %s6469_s14, 2 }
  0x56   : > { %p6444_p6 = scmp.ne.s32.totalorder %s6434_s29, 0  ;;  %p4609_p11 = scmp.lt.s32.totalorder %s5141_s25, 4 }
  0x57   : > { %s224_s26 = sand.u32 1, %s5121_s20   ;;  %s6471_s14 = smov (%p36_p10, %s6469_s14), 0 }
  0x58   : > { %p5329_p8 = por %p6444_p6, %p50_p1  ;;  %6446 = sst [smem:[#allocation18_spill]] %s6471_s14 }
  0x59   : > { %s4576_s27 = smul.u32 176, %s224_s26  ;;  %s38_s8 = ssub.s32 %s5137_s24, %s6471_s14 }
  0x5a   : > { %s4577_s9 = smul.u32 44, %s5133_s23  ;;  %s40_s18 = sor.u32 %s39_s16, %s38_s8 }
  0x5b   : > { %p41_p13 = scmp.eq.s32.totalorder %s40_s18, 0  ;;  %s4578_s6 = smul.u32 88, %s5137_s24 }
  0x5c   : > { %s228_s11 = scalar_lea.vmem [#allocation4], %s4576_s27  ;;  %p5343_p0 = pnand %p4609_p11, %p5323_p4 }
  0x5d   : > { %s237_s13 = sshll.u32 %s228_s11, 4  ;;  %s234_s3 = sadd.s32 %s4578_s6, %s4577_s9  ;;  %s5350_s13 = int_to_ptr.vmem [resolvable:$true] %s237_s13 }
  0x5e   : > { %s5348_s1 = scalar_select %p41_p13, %s5121_s20, %s43_s15  }
  0x5f   : > { %s3637_s10 = sshll.u32 %s234_s3, 6  ;;  %s5357_s11 = scalar_lea.sflag [#allocation5], %s224_s26 }
  0x60   : > { %s5355_s16 = scalar_lea.hbm %s6412_s0, %s3637_s10  ;;  %p5011_p5 = pneg %p5343_p0 }
  0x61   : > { %s5009_s17 = scalar_lea.hbm %s5355_s16, 2816  ;;  %s5014_s23 = scalar_lea.hbm %s6412_s0, 11264 }
  0x62   : > { %p5010_p3 = scmp.ne.s32.totalorder %s5355_s16, %s5009_s17  ;;  %p5015_p12 = scmp.lt.u32.totalorder %s5355_s16, %s6412_s0 }
  0x63   : > { %p5016_p1 = scmp.lt.u32.totalorder %s5014_s23, %s5009_s17  ;;  %p5018_p4 = scmp.lt.u32.totalorder %s5009_s17, %s5355_s16 }
  0x64   : > { %p5012_p7 = pnand %p5011_p5, %p5010_p3 }
  0x65   : > { %p5017_p2 = por %p5016_p1, %p5015_p12 }
  0x66   : > { %p5013_p9 = pneg %p5012_p7 }
  0x67   : > { %p5019_p10 = por %p5018_p4, %p5017_p2 }
  0x69   : > { %p5020_p6 = pnand %p5019_p10, %p5013_p9 }
  0x6b   : > { %5023 = shalt.err (!%p5020_p6)
}
  0x6c   : > { %s5024_s26 = scalar_lea.vmem %s5350_s13, 2816  ;;  %s5147_s27 = smov [#allocation4]  }
  0x6d   : > { %p5025_p11 = scmp.ne.s32.totalorder %s5350_s13, %s5024_s26  ;;  %s5029_s8 = sshll.u32 %s5147_s27, 4  ;;  %s5030_s8 = int_to_ptr.vmem [resolvable:$false] %s5029_s8 }
  0x6e   : > { %s5031_s9 = scalar_lea.vmem %s5030_s8, 5632  ;;  %p5032_p7 = scmp.lt.s32.totalorder %s5350_s13, %s5030_s8 }
  0x6f   : > { %p5027_p13 = pnand %p5025_p11, %p5011_p5  ;;  %p5033_p12 = scmp.lt.s32.totalorder %s5031_s9, %s5024_s26 }
  0x71   : > { %p5028_p3 = pneg %p5027_p13  ;;  %p5034_p1 = por %p5033_p12, %p5032_p7 }
  0x73   : > { %p5035_p2 = pnand %p5034_p1, %p5028_p3 }
  0x75   : > { %5038 = shalt.err (!%p5035_p2)
}
  0x76   : > { %s6448_s18 = smov 4   ;;  %s6449_s6 = smov 64  }
  0x77   : > { %4602 = dma.hbm_to_vmem [thread:$0]  (!%p5343_p0), %s5355_s16, 2816, %s5350_s13, %s5357_s11, %s6449_s6, %s6449_s6, %s6448_s18  }
  0x78   : > { %p6450_p5 = scmp.ne.s32.totalorder %s6438_s7, 0 }
  0x79   : > { %s5391_s17 = sand.u32 (!%p6450_p5), 1, %s5117_s19   ;;  %p6451_p9 = scmp.ne.s32.totalorder (!%p6450_p5), %s6435_s30, 0 }
  0x7a   : > { %249 = sbr.rel (%p6450_p5) target bundleno = 965 (0x3c5), region = 40  ;;  %s252_s15 = scalar_lea.sflag (!%p6450_p5), [#allocation5], %s5391_s17 }
  0x7b   : > { %s4579_s3 = smul.u32 (!%p6450_p5), 176, %s5391_s17 }
  0x7d   : > { %s5395_s23 = scalar_lea.vmem (!%p6450_p5), [#allocation4], %s4579_s3 }
  0x81   : > { %5100 = dma.done.wait (%p6451_p9), %s252_s15, 2816  }
  0x82   : > { %5102 = vsyncadd (%p6451_p9), %s252_s15, 4294964480  ;;  %p6452_p0 = scmp.ne.s32.totalorder %s6433_s28, 0 }
  0x84   : > { %5104 = dma.done.wait (%p6452_p0), [#allocation8], 10240  }
  0x85   : > { %5106 = vsyncadd (%p6452_p0), [#allocation8], 4294957056  ;;  %v4683_v0 = vld [vmem:[#allocation7 + $0x40] sm:$0xff]   ;;  %v4686_v3 = vld [vmem:[#allocation7 + $0x48] sm:$0xff]   ;;  %vm615_vm0 = vsmask.f32 7424 }
  0x86   : > { %v4684_v1 = vld [vmem:[#allocation7 + $0x80] sm:$0xff]   ;;  %3792 = vmatprep.subr.bf16.mxu0 %v4683_v0  ;;  %v4687_v4 = vld [vmem:[#allocation7 + $0x88] sm:$0xff]   ;;  %v4689_v6 = vld [vmem:[#allocation7 + $0x50] sm:$0xff]   ;;  %vm964_vm1 = vcmask 1046528   ;;  %s3641_s29 = sshll.u32 %s5391_s17, 8  ;;  %s3787_s11 = sshll.u32 %s5125_s21, 5 }
  0x87   : > { %v4685_v2 = vld [vmem:[#allocation7] sm:$0xff]   ;;  %4224 = vmatprep.subr.bf16.mxu1 %v4684_v1  ;;  %v4688_v5 = vld [vmem:[#allocation7 + $0x8] sm:$0xff]   ;;  %v4690_v7 = vld [vmem:[#allocation7 + $0x90] sm:$0xff]   ;;  %s6158_s16 = scalar_lea.vmem [#allocation10], %s3641_s29  ;;  %s3788_s10 = sshll.u32 %s5129_s22, 6 }
  0x88   : > { %3793 = vmatpush3.bf16.msra.mxu0 %v4685_v2  ;;  %4225 = vmatpush3.bf16.msra.mxu1 %v4684_v1  ;;  %v4691_v8 = vld [vmem:[#allocation7 + $0x10] sm:$0xff]   ;;  %v4692_v9 = vld [vmem:[#allocation7 + $0x58] sm:$0xff]   ;;  %v4695_v12 = vld [vmem:[#allocation7 + $0x60] sm:$0xff]   ;;  %s3519_s21 = sadd.s32 %s3788_s10, %s3787_s11  ;;  %s3522_s14 = sshll.u32 %s6158_s16, 4  ;;  %s6349_s14 = int_to_ptr.vmem [resolvable:$true] %s3522_s14 }
  0x89   : > { %3794 = vmatprep.subr.bf16.mxu0 %v4686_v3  ;;  %4226 = vmatprep.subr.bf16.mxu1 %v4687_v4  ;;  %v4693_v10 = vld [vmem:[#allocation7 + $0x98] sm:$0xff]   ;;  %v4696_v13 = vld [vmem:[#allocation7 + $0xa0] sm:$0xff]   ;;  %v4698_v15 = vld [vmem:[#allocation7 + $0x68] sm:$0xff]   ;;  %s3789_s22 = sshll.u32 %s3519_s21, 7  ;;  %s3507_s9 = scalar_lea.sflag [#allocation6], %s5391_s17 }
  0x8a   : > { %v4694_v11 = vld [vmem:[#allocation7 + $0x18] sm:$0xff]   ;;  %v4697_v14 = vld [vmem:[#allocation7 + $0x20] sm:$0xff]   ;;  %v4699_v16 = vld [vmem:[#allocation7 + $0xa8] sm:$0xff]   ;;  %s6347_s8 = scalar_lea.hbm %s6417_s5, %s3789_s22  ;;  %s5039_s18 = scalar_lea.vmem %s6349_s14, 4096 }
  0x8b   : > { %v4700_v17 = vld [vmem:[#allocation7 + $0x28] sm:$0xff]   ;;  %v4701_v18 = vld [vmem:[#allocation7 + $0x70] sm:$0xff]   ;;  %v4704_v21 = vld [vmem:[#allocation7 + $0x78] sm:$0xff]   ;;  %p5040_p4 = scmp.ne.s32.totalorder %s6349_s14, %s5039_s18  ;;  %s5148_s6 = smov [#allocation10]  }
  0x8c   : > { %3795 = vmatpush3.bf16.msra.mxu0 %v4688_v5  ;;  %4227 = vmatpush3.bf16.msra.mxu1 %v4687_v4  ;;  %v4702_v19 = vld [vmem:[#allocation7 + $0xb0] sm:$0xff]   ;;  %v4705_v22 = vld [vmem:[#allocation7 + $0xb8] sm:$0xff]   ;;  %v4713_v38 = vld [vmem:[#allocation7 + $0x100] sm:$0xff]   ;;  %s5043_s3 = sshll.u32 %s5148_s6, 4  ;;  %s5044_s3 = int_to_ptr.vmem [resolvable:$false] %s5043_s3 }
  0x8d   : > { %3796 = vmatprep.subr.bf16.mxu0 %v4689_v6  ;;  %4228 = vmatprep.subr.bf16.mxu1 %v4690_v7  ;;  %v4703_v20 = vld [vmem:[#allocation7 + $0x30] sm:$0xff]   ;;  %v4708_v24 = vld [vmem:[%s5395_s23 + $0x8] sm:$0xff]   ;;  %v4714_v42 = vld [vmem:[#allocation7 + $0xc0] sm:$0xff]   ;;  %p5041_p10 = pnand %p5040_p4, %p5329_p8  ;;  %s5045_s15 = scalar_lea.vmem %s5044_s3, 8192 }
  0x8e   : > { %v4707_v23 = vld [vmem:[%s5395_s23] sm:$0xff]   ;;  %v4706_v25 = vld [vmem:[#allocation7 + $0x38] sm:$0xff]   ;;  %v624_v28 = vshll.u32 %v4708_v24, 16  ;;  %v4712_v36 = vld [vmem:[%s5395_s23 + $0x10] sm:$0xff]   ;;  %v628_v39 = vshrl.u32 %v4708_v24, 16  ;;  %p5046_p11 = scmp.lt.s32.totalorder %s6349_s14, %s5044_s3  ;;  %p5047_p13 = scmp.lt.s32.totalorder %s5045_s15, %s5039_s18 }
  0x8f   : > { %v617_v26 = vshrl.u32 %v4707_v23, 16  ;;  %v619_v27 = vshll.u32 %v4707_v23, 16  ;;  %v4710_v29 = vld [vmem:[%s5395_s23 + $0x8] sm:$0xff]   ;;  %v4709_v30 = vld [vmem:[%s5395_s23] sm:$0xfe]   ;;  %v968_v41 = vrot.slane %v4712_v36, 1  ;;  %p5042_p6 = pneg %p5041_p10 }
  0x90   : > { %3797 = vmatpush3.bf16.msra.mxu0 %v4691_v8  ;;  %4229 = vmatpush3.bf16.msra.mxu1 %v4690_v7  ;;  %v626_v32 = vrot.slane %v624_v28, 1  ;;  %v966_v33 = vrot.slane %v4710_v29, 1  ;;  %v4711_v34 = vld [vmem:[%s5395_s23] sm:$0xff]   ;;  %v965_v35 = vrot.slane %v4709_v30, 1  ;;  %v4715_v44 = vld [vmem:[%s5395_s23 + $0x10] sm:$0xff]   ;;  %v4716_v46 = vld [vmem:[%s5395_s23 + $0x18] sm:$0xff]   ;;  %p5048_p3 = por %p5047_p13, %p5046_p11 }
  0x91   : > { %3798 = vmatprep.subr.bf16.mxu0 %v4692_v9  ;;  %4230 = vmatprep.subr.bf16.mxu1 %v4693_v10  ;;  %v621_v31 = vrot.slane %v619_v27, 1  ;;  %v632_v48 = vshll.u32 %v4715_v44, 16  ;;  %v970_v49 = vrot.slane %v4716_v46, 1  ;;  %v4718_v50 = vld [vmem:[%s5395_s23 + $0x20] sm:$0xff]   ;;  %v4717_v52 = vld [vmem:[%s5395_s23 + $0x8] sm:$0xff]   ;;  %v4721_v58 = vld [vmem:[%s5395_s23 + $0x18] sm:$0xff]  }
  0x92   : > { %v967_v40 = vsel %vm964_vm1, %v965_v35, %v966_v33  ;;  %v969_v45 = vsel %vm964_vm1, %v966_v33, %v968_v41  ;;  %v630_v47 = vor.u32 %v628_v39, %v626_v32  ;;  %v4719_v53 = vld [vmem:[#allocation7 + $0x108] sm:$0xff]   ;;  %v972_v55 = vrot.slane %v4718_v50, 1  ;;  %v4724_v1 = vld [vmem:[%s5395_s23 + $0x30] sm:$0xff]   ;;  %v4727_v8 = vld [vmem:[%s5395_s23 + $0x20] sm:$0xff]   ;;  %p5049_p7 = pnand %p5048_p3, %p5042_p6 }
  0x93   : > { %v622_v37 = vor.u32 %v621_v31, %v617_v26  ;;  %4240 = vmatprep.mubr.bf16.mxu1 %v967_v40  ;;  %v634_v51 = vrot.slane %v632_v48, 1  ;;  %v5419_v54 = vsel %vm964_vm1, %v968_v41, %v970_v49  ;;  %v4720_v56 = vld [vmem:[#allocation7 + $0xc8] sm:$0xff]   ;;  %v636_v59 = vshrl.u32 %v4715_v44, 16  ;;  %v4725_v3 = vld [vmem:[#allocation7 + $0x110] sm:$0xff]  }
  0x94   : > { %3799 = vmatpush3.bf16.msra.mxu0 %v4694_v11  ;;  %4231 = vmatpush3.bf16.msra.mxu1 %v4693_v10  ;;  %v5425_v60 = vsel %vm964_vm1, %v970_v49, %v972_v55  ;;  %v4722_v61 = vld [vmem:[%s5395_s23 + $0x28] sm:$0xff]   ;;  %v640_v63 = vshll.u32 %v4721_v58, 16  ;;  %v976_v5 = vrot.slane %v4724_v1, 1  ;;  %v4726_v6 = vld [vmem:[#allocation7 + $0xd0] sm:$0xff]   ;;  %v644_v9 = vshrl.u32 %v4721_v58, 16  ;;  %v4728_v10 = vld [vmem:[%s5395_s23 + $0x38] sm:$0xff]  }
  0x95   : > { %3800 = vmatprep.subr.bf16.mxu0 %v4695_v12  ;;  %4232 = vmatprep.subr.bf16.mxu1 %v4696_v13  ;;  %v627_v43 = vsel %vm615_vm0, %v622_v37, %v626_v32  ;;  %v635_v57 = vsel %vm615_vm0, %v630_v47, %v634_v51  ;;  %v638_v62 = vor.u32 %v636_v59, %v634_v51  ;;  %v974_v0 = vrot.slane %v4722_v61, 1  ;;  %v5441_v11 = vld [vmem:[%s5395_s23 + $0x10] sm:$0xff]   ;;  %v5460_v26 = vld [vmem:[%s5395_s23 + $0x18] sm:$0xff]   ;;  %v4742_v46 = vld [vmem:[%s5395_s23 + $0x60] sm:$0xff]  }
  0x96   : > { %1318 = vmatprep.mubr.bf16.mxu0 %v627_v43  ;;  %v642_v2 = vrot.slane %v640_v63, 1  ;;  %v652_v23 = vshrl.u32 %v4727_v8, 16  ;;  %v4736_v30 = vld [vmem:[%s5395_s23 + $0x50] sm:$0xff]   ;;  %v4740_v39 = vld [vmem:[%s5395_s23 + $0x58] sm:$0xff]   ;;  %v5479_v43 = vld [vmem:[%s5395_s23 + $0x20] sm:$0xff]  }
  0x97   : > { %v5431_v4 = vsel %vm964_vm1, %v972_v55, %v974_v0  ;;  %v4737_v32 = vld [vmem:[#allocation7 + $0x120] sm:$0xff]   ;;  %v984_v41 = vrot.slane %v4736_v30, 1  ;;  %v4743_v47 = vld [vmem:[#allocation7 + $0x128] sm:$0xff]   ;;  %v4749_v58 = vld [vmem:[#allocation7 + $0x130] sm:$0xff]  }
  0x98   : > { %3801 = vmatpush3.bf16.msra.mxu0 %v4697_v14  ;;  %4233 = vmatpush3.bf16.msra.mxu1 %v4696_v13  ;;  %v5434_v7 = vsel %vm615_vm0, %v638_v62, %v642_v2  ;;  %v646_v12 = vor.u32 %v644_v9, %v642_v2  ;;  %v648_v13 = vshll.u32 %v4727_v8, 16  ;;  %v5444_v14 = vsel %vm964_vm1, %v974_v0, %v976_v5  ;;  %v4739_v37 = vld [vmem:[%s5395_s23 + $0x30] sm:$0xff]   ;;  %v4744_v48 = vld [vmem:[#allocation7 + $0xe8] sm:$0xff]   ;;  %v4751_v0 = vld [vmem:[%s5395_s23 + $0x40] sm:$0xff]  }
  0x99   : > { %3802 = vmatprep.subr.bf16.mxu0 %v4698_v15  ;;  %4234 = vmatprep.subr.bf16.mxu1 %v4699_v16  ;;  %v978_v15 = vrot.slane %v4728_v10, 1  ;;  %v664_v40 = vshll.u32 %v4739_v37, 16  ;;  %v4745_v49 = vld [vmem:[%s5395_s23 + $0x38] sm:$0xff]   ;;  %v4746_v51 = vld [vmem:[%s5395_s23 + $0x68] sm:$0xff]   ;;  %v668_v55 = vshrl.u32 %v4739_v37, 16  ;;  %v4750_v61 = vld [vmem:[#allocation7 + $0xf0] sm:$0xff]  }
  0x9a   : > { %v990_v59 = vrot.slane %v4746_v51, 1  ;;  %v5499_v1 = vld [vmem:[%s5395_s23 + $0x28] sm:$0xff]   ;;  %v4748_v2 = vld [vmem:[%s5395_s23 + $0x70] sm:$0xff]   ;;  %v680_v10 = vshll.u32 %v4751_v0, 16 }
  0x9b   : > { %v4765_v37 = vld [vmem:[#allocation7 + $0x188] sm:$0xff]  }
  0x9c   : > { %3803 = vmatpush3.bf16.msra.mxu0 %v4700_v17  ;;  %4235 = vmatpush3.bf16.msra.mxu1 %v4699_v16  ;;  %v4730_v16 = vld [vmem:[%s5395_s23 + $0x40] sm:$0xff]   ;;  %v650_v17 = vrot.slane %v648_v13, 1  ;;  %v4756_v13 = vld [vmem:[#allocation7 + $0xf8] sm:$0xff]  }
  0x9d   : > { %3804 = vmatprep.subr.bf16.mxu0 %v4701_v18  ;;  %4236 = vmatprep.subr.bf16.mxu1 %v4702_v19  ;;  %v4731_v18 = vld [vmem:[#allocation7 + $0x118] sm:$0xff]   ;;  %v980_v24 = vrot.slane %v4730_v16, 1  ;;  %v4757_v16 = vld [vmem:[#allocation7 + $0x1c0] sm:$0xff]  }
  0x9e   : > { %v654_v27 = vor.u32 %v652_v23, %v650_v17  ;;  %v4759_v23 = vld [vmem:[%s5395_s23 + $0x48] sm:$0xff]  }
  0x9f   : > { %v5464_v33 = vsel %vm964_vm1, %v978_v15, %v980_v24 }
  0xa0   : > { %3805 = vmatpush3.bf16.msra.mxu0 %v4703_v20  ;;  %4237 = vmatpush3.bf16.msra.mxu1 %v4702_v19  ;;  %v5448_v19 = vsel %vm964_vm1, %v976_v5, %v978_v15  ;;  %v4732_v20 = vld [vmem:[#allocation7 + $0xd8] sm:$0xff]   ;;  %v676_v5 = vshrl.u32 %v4745_v49, 16  ;;  %v992_v15 = vrot.slane %v4748_v2, 1  ;;  %v4775_v2 = vld [vmem:[#allocation7 + $0x150] sm:$0xff]  }
  0xa1   : > { %3806 = vmatprep.subr.bf16.mxu0 %v4704_v21  ;;  %4238 = vmatprep.subr.bf16.mxu1 %v4705_v22  ;;  %v5453_v21 = vsel %vm615_vm0, %v646_v12, %v650_v17  ;;  %v4755_v12 = vld [vmem:[#allocation7 + $0x138] sm:$0xff]  }
  0xa4   : > { %3807 = vmatpush3.bf16.msra.mxu0 %v4706_v25  ;;  %4239 = vmatpush3.bf16.msra.mxu1 %v4705_v22  ;;  %v4733_v22 = vld [vmem:[%s5395_s23 + $0x28] sm:$0xff]  }
  0xa5   : > { %3928 = vmatprep.subr.bf16.mxu1 %v4713_v38  ;;  %v4734_v25 = vld [vmem:[%s5395_s23 + $0x48] sm:$0xff]   ;;  %v656_v28 = vshll.u32 %v4733_v22, 16  ;;  %v660_v38 = vshrl.u32 %v4733_v22, 16  ;;  %v682_v22 = vrot.slane %v680_v10, 1  ;;  %4064 = vmatprep.subr.bf16.mxu0 %v4757_v16  ;;  %v4783_v10 = vld [vmem:[#allocation7 + $0x1e0] sm:$0xff]  }
  0xa6   : > { %v982_v29 = vrot.slane %v4734_v25, 1  ;;  %v4761_v25 = vld [vmem:[#allocation7 + $0x140] sm:$0xff]  }
  0xa7   : > { %1319 = vmatmul.mubr.bf16.vlgmr.msra.gmra.mrb[0].mxu0 %v4711_v34  ;;  %4241 = vmatmul.mubr.bf16.vlgmr.msra.gmra.mrb[0].mxu1 %v969_v45  ;;  %v658_v31 = vrot.slane %v656_v28, 1  ;;  %v4738_v34 = vld [vmem:[#allocation7 + $0xe0] sm:$0xff]   ;;  %v666_v45 = vrot.slane %v664_v40, 1 }
  0xa8   : > { %3929 = vmatpush3.bf16.msra.mxu1 %v4714_v42  ;;  %4244 = vmatprep.mubr.bf16.mxu1 %v5419_v54  ;;  %v5470_v36 = vsel %vm964_vm1, %v980_v24, %v982_v29  ;;  %v986_v42 = vrot.slane %v4740_v39, 1  ;;  %v5484_v50 = vsel %vm964_vm1, %v982_v29, %v984_v41  ;;  %v5518_v24 = vld [vmem:[%s5395_s23 + $0x30] sm:$0xff]   ;;  %v5524_v28 = vld [vmem:[%s5395_s23 + $0x80] sm:$0xff]  }
  0xa9   : > { %3930 = vmatprep.subr.bf16.mxu1 %v4719_v53  ;;  %1326 = vmatprep.mubr.bf16.mxu0 %v635_v57  ;;  %v5467_v35 = vsel %vm615_vm0, %v654_v27, %v658_v31  ;;  %v662_v44 = vor.u32 %v660_v38, %v658_v31  ;;  %v988_v57 = vrot.slane %v4742_v46, 1  ;;  %v670_v62 = vor.u32 %v668_v55, %v666_v45 }
  0xaa   : > { %v5491_v53 = vsel %vm964_vm1, %v984_v41, %v986_v42  ;;  %v5521_v27 = vsel %vm964_vm1, %v990_v59, %v992_v15  ;;  %v684_v31 = vshrl.u32 %v4751_v0, 16  ;;  %v996_v38 = vrot.slane %v5524_v28, 1  ;;  %v4762_v41 = vld [vmem:[%s5395_s23 + $0x50] sm:$0xff]   ;;  %v4779_v0 = vld [vmem:[#allocation7 + $0x198] sm:$0xff]  }
  0xab   : > { %v5510_v9 = vsel %vm964_vm1, %v988_v57, %v990_v59  ;;  %v4778_v59 = vld [vmem:[#allocation7 + $0x1d8] sm:$0xff]  }
  0xac   : > { %3931 = vmatpush3.bf16.msra.mxu1 %v4720_v56  ;;  %v672_v56 = vshll.u32 %v4745_v49, 16  ;;  %v686_v39 = vor.u32 %v684_v31, %v682_v22  ;;  %v4772_v49 = vld [vmem:[#allocation7 + $0x190] sm:$0xff]   ;;  %v4773_v31 = vld [vmem:[%s5395_s23 + $0x68] sm:$0xff]   ;;  %v4813_v28 = vld [vmem:[%s5395_s23 + $0x98] sm:$0xff]  }
  0xad   : > { %3932 = vmatprep.subr.bf16.mxu1 %v4725_v3  ;;  %v5503_v3 = vsel %vm964_vm1, %v986_v42, %v988_v57  ;;  %v5539_v42 = vld [vmem:[%s5395_s23 + $0x38] sm:$0xff]   ;;  %v5555_v57 = vld [vmem:[%s5395_s23 + $0x40] sm:$0xff]  }
  0xae   : > { %v674_v63 = vrot.slane %v672_v56, 1  ;;  %v4766_v56 = vld [vmem:[%s5395_s23 + $0x58] sm:$0xff]  }
  0xaf   : > { %1327 = vmatmul.mubr.bf16.gmra.mrb[4].mxu0 %v4717_v52  ;;  %4245 = vmatmul.mubr.bf16.gmra.mrb[4].mxu1 %v5425_v60  ;;  %v5488_v52 = vsel %vm615_vm0, %v662_v44, %v666_v45  ;;  %v692_v45 = vshrl.u32 %v4759_v23, 16 }
  0xb0   : > { %4248 = vmatprep.mubr.bf16.mxu1 %v5431_v4  ;;  %1334 = vmatprep.mubr.bf16.mxu0 %v5434_v7  ;;  %v5507_v8 = vsel %vm615_vm0, %v670_v62, %v674_v63  ;;  %v704_v62 = vshll.u32 %v4766_v56, 16 }
  0xb1   : > { %3933 = vmatpush3.bf16.msra.mxu1 %v4726_v6  ;;  %v4752_v6 = vld [vmem:[%s5395_s23 + $0x78] sm:$0xff]  }
  0xb2   : > { %3934 = vmatprep.subr.bf16.mxu1 %v4731_v18  ;;  %v994_v17 = vrot.slane %v4752_v6, 1  ;;  %v4758_v18 = vld [vmem:[#allocation7 + $0x180] sm:$0xff]   ;;  %v706_v6 = vrot.slane %v704_v62, 1 }
  0xb3   : > { %4065 = vmatpush3.bf16.msra.mxu0 %v4758_v18  ;;  %v4786_v18 = vld [vmem:[#allocation7 + $0x1a8] sm:$0xff]  }
  0xb4   : > { %v5530_v30 = vsel %vm964_vm1, %v992_v15, %v994_v17  ;;  %v5544_v44 = vsel %vm964_vm1, %v994_v17, %v996_v38  ;;  %v708_v15 = vshrl.u32 %v4766_v56, 16 }
  0xb5   : > { %3935 = vmatpush3.bf16.msra.mxu1 %v4732_v20  ;;  %v678_v20 = vor.u32 %v676_v5, %v674_v63  ;;  %v4768_v63 = vld [vmem:[#allocation7 + $0x148] sm:$0xff]  }
  0xb6   : > { %3936 = vmatprep.subr.bf16.mxu1 %v4737_v32  ;;  %v688_v32 = vshll.u32 %v4759_v23, 16  ;;  %v710_v23 = vor.u32 %v708_v15, %v706_v6 }
  0xb7   : > { %1335 = vmatmul.mubr.bf16.gmra.mrb[8].mxu0 %v5441_v11  ;;  %4249 = vmatmul.mubr.bf16.gmra.mrb[8].mxu1 %v5444_v14  ;;  %v5527_v29 = vsel %vm615_vm0, %v678_v20, %v682_v22  ;;  %v4789_v20 = vld [vmem:[#allocation7 + $0x1f0] sm:$0xff]  }
  0xb8   : > { %1342 = vmatprep.mubr.bf16.mxu0 %v5453_v21  ;;  %4252 = vmatprep.mubr.bf16.mxu1 %v5448_v19  ;;  %v690_v40 = vrot.slane %v688_v32, 1  ;;  %v5576_v22 = vld [vmem:[%s5395_s23 + $0x50] sm:$0xff]  }
  0xb9   : > { %3937 = vmatpush3.bf16.msra.mxu1 %v4738_v34  ;;  %v4764_v34 = vld [vmem:[#allocation7 + $0x1c8] sm:$0xff]   ;;  %v4790_v32 = vld [vmem:[#allocation7 + $0x1b0] sm:$0xff]  }
  0xba   : > { %3938 = vmatprep.subr.bf16.mxu1 %v4743_v47  ;;  %4066 = vmatprep.subr.bf16.mxu0 %v4764_v34  ;;  %v5547_v46 = vsel %vm615_vm0, %v686_v39, %v690_v40  ;;  %v696_v47 = vshll.u32 %v4762_v41, 16  ;;  %v694_v51 = vor.u32 %v692_v45, %v690_v40  ;;  %v4793_v34 = vld [vmem:[#allocation7 + $0x160] sm:$0xff]   ;;  %v720_v40 = vshll.u32 %v4773_v31, 16  ;;  %v4794_v45 = vld [vmem:[#allocation7 + $0x168] sm:$0xff]  }
  0xbb   : > { %4067 = vmatpush3.bf16.msra.mxu0 %v4765_v37  ;;  %v4791_v37 = vld [vmem:[#allocation7 + $0x1f8] sm:$0xff]  }
  0xbc   : > { %v698_v55 = vrot.slane %v696_v47, 1  ;;  %v4776_v47 = vld [vmem:[%s5395_s23 + $0x70] sm:$0xff]  }
  0xbd   : > { %3939 = vmatpush3.bf16.msra.mxu1 %v4744_v48  ;;  %v4771_v48 = vld [vmem:[#allocation7 + $0x1d0] sm:$0xff]   ;;  %v728_v56 = vshll.u32 %v4776_v47, 16 }
  0xbe   : > { %3940 = vmatprep.subr.bf16.mxu1 %v4749_v58  ;;  %4068 = vmatprep.subr.bf16.mxu0 %v4771_v48  ;;  %v700_v58 = vshrl.u32 %v4762_v41, 16  ;;  %v4792_v41 = vld [vmem:[#allocation7 + $0x1b8] sm:$0xff]  }
  0xbf   : > { %1343 = vmatmul.mubr.bf16.gmra.mrb[12].mxu0 %v5460_v26  ;;  %4253 = vmatmul.mubr.bf16.gmra.mrb[12].mxu1 %v5464_v33  ;;  %v5588_v48 = vld [vmem:[%s5395_s23 + $0x58] sm:$0xff]  }
  0xc0   : > { %1350 = vmatprep.mubr.bf16.mxu0 %v5467_v35  ;;  %4256 = vmatprep.mubr.bf16.mxu1 %v5470_v36  ;;  %v702_v5 = vor.u32 %v700_v58, %v698_v55  ;;  %v4780_v58 = vld [vmem:[%s5395_s23 + $0x78] sm:$0xff]  }
  0xc1   : > { %3941 = vmatpush3.bf16.msra.mxu1 %v4750_v61  ;;  %4069 = vmatpush3.bf16.msra.mxu0 %v4772_v49  ;;  %v5558_v61 = vsel %vm615_vm0, %v694_v51, %v698_v55  ;;  %v722_v51 = vrot.slane %v720_v40, 1  ;;  %v4795_v55 = vld [vmem:[#allocation7 + $0x170] sm:$0xff]  }
  0xc2   : > { %3942 = vmatprep.subr.bf16.mxu1 %v4755_v12  ;;  %4070 = vmatprep.subr.bf16.mxu0 %v4778_v59  ;;  %v4784_v12 = vld [vmem:[#allocation7 + $0x1a0] sm:$0xff]   ;;  %v5569_v16 = vsel %vm615_vm0, %v702_v5, %v706_v6  ;;  %v724_v59 = vshrl.u32 %v4773_v31, 16 }
  0xc3   : > { %v5598_v5 = vld [vmem:[#allocation7 + $0x200] sm:$0xff]  }
  0xc4   : > { %v5601_v6 = vld [vmem:[%s5395_s23 + $0x60] sm:$0xff]  }
  0xc5   : > { %3943 = vmatpush3.bf16.msra.mxu1 %v4756_v13  ;;  %4071 = vmatpush3.bf16.msra.mxu0 %v4779_v0  ;;  %v5566_v13 = vld [vmem:[%s5395_s23 + $0x48] sm:$0xff]  }
  0xc6   : > { %4272 = vmatprep.subr.bf16.mxu1 %v4761_v25  ;;  %4072 = vmatprep.subr.bf16.mxu0 %v4783_v10  ;;  %v4798_v0 = vld [vmem:[#allocation7 + $0x178] sm:$0xff]   ;;  %v726_v10 = vor.u32 %v724_v59, %v722_v51 }
  0xc7   : > { %1351 = vmatmul.mubr.bf16.gmra.mrb[16].mxu0 %v5479_v43  ;;  %4257 = vmatmul.mubr.bf16.gmra.mrb[16].mxu1 %v5484_v50 }
  0xc8   : > { %1358 = vmatprep.mubr.bf16.mxu0 %v5488_v52  ;;  %4260 = vmatprep.mubr.bf16.mxu1 %v5491_v53 }
  0xc9   : > { %4073 = vmatpush3.bf16.msra.mxu0 %v4784_v12 }
  0xcf   : > { %1359 = vmatmul.mubr.bf16.gmra.mrb[20].mxu0 %v5499_v1  ;;  %4261 = vmatmul.mubr.bf16.gmra.mrb[20].mxu1 %v5503_v3 }
  0xd0   : > { %1366 = vmatprep.mubr.bf16.mxu0 %v5507_v8  ;;  %4264 = vmatprep.mubr.bf16.mxu1 %v5510_v9 }
  0xd7   : > { %1367 = vmatmul.mubr.bf16.gmra.mrb[24].mxu0 %v5518_v24  ;;  %4265 = vmatmul.mubr.bf16.gmra.mrb[24].mxu1 %v5521_v27 }
  0xd8   : > { %1374 = vmatprep.mubr.bf16.mxu0 %v5527_v29  ;;  %4268 = vmatprep.mubr.bf16.mxu1 %v5530_v30 }
  0xdf   : > { %1375 = vmatmul.mubr.bf16.gmra.mrb[28].mxu0 %v5539_v42  ;;  %4269 = vmatmul.mubr.bf16.gmra.mrb[28].mxu1 %v5544_v44 }
  0xe0   : > { %1382 = vmatprep.mubr.bf16.mxu0 %v5547_v46  ;;  %1945 = vmatprep.mubr.bf16.mxu1 %v5434_v7  ;;  %v4769_v7 = vld [vmem:[%s5395_s23 + $0x60] sm:$0xff]  }
  0xe1   : > { %v712_v17 = vshll.u32 %v4769_v7, 16 }
  0xe7   : > { %1383 = vmatmul.mubr.bf16.gmra.mrb[32].mxu0 %v5555_v57  ;;  %1946 = vmatmul.mubr.bf16.vlgmr.msra.gmra.mrb[32].mxu1 %v5441_v11  ;;  %v4782_v11 = vld [vmem:[#allocation7 + $0x158] sm:$0xff]  }
  0xe8   : > { %4273 = vmatpush3.bf16.msra.mxu1 %v4761_v25  ;;  %1390 = vmatprep.mubr.bf16.mxu0 %v5558_v61  ;;  %v714_v25 = vrot.slane %v712_v17, 1 }
  0xe9   : > { %1953 = vmatprep.mubr.bf16.mxu1 %v5453_v21  ;;  %4274 = vmatprep.subr.bf16.mxu1 %v4768_v63  ;;  %v4785_v21 = vld [vmem:[#allocation7 + $0x1e8] sm:$0xff]  }
  0xea   : > { %4074 = vmatprep.subr.bf16.mxu0 %v4785_v21  ;;  %v5580_v39 = vsel %vm615_vm0, %v710_v23, %v714_v25  ;;  %v5613_v21 = vld [vmem:[%s5395_s23 + $0x68] sm:$0xff]  }
  0xeb   : > { %4075 = vmatpush3.bf16.msra.mxu0 %v4786_v18 }
  0xec   : > { %4275 = vmatpush3.bf16.msra.mxu1 %v4768_v63  ;;  %4076 = vmatprep.subr.bf16.mxu0 %v4789_v20  ;;  %v732_v63 = vshrl.u32 %v4776_v47, 16  ;;  %v740_v20 = vshrl.u32 %v4780_v58, 16 }
  0xed   : > { %4276 = vmatprep.subr.bf16.mxu1 %v4775_v2 }
  0xef   : > { %1391 = vmatmul.mubr.bf16.gmra.mrb[36].mxu0 %v5566_v13  ;;  %1954 = vmatmul.mubr.bf16.gmra.mrb[36].mxu1 %v5460_v26  ;;  %v716_v26 = vshrl.u32 %v4769_v7, 16  ;;  %v730_v7 = vrot.slane %v728_v56, 1 }
  0xf0   : > { %1398 = vmatprep.mubr.bf16.mxu0 %v5569_v16  ;;  %1961 = vmatprep.mubr.bf16.mxu1 %v5467_v35 }
  0xf1   : > { %4277 = vmatpush3.bf16.msra.mxu1 %v4775_v2  ;;  %4077 = vmatpush3.bf16.msra.mxu0 %v4790_v32  ;;  %v718_v49 = vor.u32 %v716_v26, %v714_v25  ;;  %v736_v2 = vshll.u32 %v4780_v58, 16  ;;  %v5604_v12 = vsel %vm615_vm0, %v726_v10, %v730_v7  ;;  %v734_v17 = vor.u32 %v732_v63, %v730_v7  ;;  %v5623_v32 = vld [vmem:[%s5395_s23 + $0x70] sm:$0xff]   ;;  %v5633_v26 = vld [vmem:[%s5395_s23 + $0x78] sm:$0xff]  }
  0xf2   : > { %4278 = vmatprep.subr.bf16.mxu1 %v4782_v11  ;;  %4078 = vmatprep.subr.bf16.mxu0 %v4791_v37  ;;  %v4807_v58 = vld [vmem:[%s5395_s23 + $0x98] sm:$0xff]   ;;  %v4817_v10 = vld [vmem:[#allocation9] sm:$0xff]  }
  0xf3   : > { %v5592_v62 = vsel %vm615_vm0, %v718_v49, %v722_v51  ;;  %v738_v15 = vrot.slane %v736_v2, 1  ;;  %v768_v2 = vshll.u32 %v4807_v58, 16 }
  0xf5   : > { %4279 = vmatpush3.bf16.msra.mxu1 %v4782_v11  ;;  %4079 = vmatpush3.bf16.msra.mxu0 %v4792_v41  ;;  %v4787_v11 = vld [vmem:[%s5395_s23 + $0x80] sm:$0xff]   ;;  %v5616_v18 = vsel %vm615_vm0, %v734_v17, %v738_v15  ;;  %v742_v25 = vor.u32 %v740_v20, %v738_v15  ;;  %v770_v15 = vrot.slane %v768_v2, 1 }
  0xf6   : > { %4280 = vmatprep.subr.bf16.mxu1 %v4793_v34  ;;  %v744_v23 = vshll.u32 %v4787_v11, 16  ;;  %v4809_v41 = vld [vmem:[#allocation7 + $0x230] sm:$0xff]   ;;  %4368 = vmatprep.subr.bf16.mxu0 %v4817_v10 }
  0xf7   : > { %1399 = vmatmul.mubr.bf16.gmra.mrb[40].mxu0 %v5576_v22  ;;  %1962 = vmatmul.mubr.bf16.gmra.mrb[40].mxu1 %v5479_v43 }
  0xf8   : > { %1406 = vmatprep.mubr.bf16.mxu0 %v5580_v39  ;;  %1969 = vmatprep.mubr.bf16.mxu1 %v5488_v52  ;;  %v746_v31 = vrot.slane %v744_v23, 1 }
  0xf9   : > { %4281 = vmatpush3.bf16.msra.mxu1 %v4793_v34 }
  0xfa   : > { %4282 = vmatprep.subr.bf16.mxu1 %v4794_v45  ;;  %v5626_v34 = vsel %vm615_vm0, %v742_v25, %v746_v31  ;;  %v4810_v25 = vld [vmem:[%s5395_s23 + $0x88] sm:$0xff]  }
  0xfd   : > { %4283 = vmatpush3.bf16.msra.mxu1 %v4794_v45 }
  0xfe   : > { %4284 = vmatprep.subr.bf16.mxu1 %v4795_v55 }
  0xff   : > { %1407 = vmatmul.mubr.bf16.gmra.mrb[44].mxu0 %v5588_v48  ;;  %1970 = vmatmul.mubr.bf16.gmra.mrb[44].mxu1 %v5499_v1 }
 0x100   : > { %1414 = vmatprep.mubr.bf16.mxu0 %v5592_v62  ;;  %1977 = vmatprep.mubr.bf16.mxu1 %v5507_v8 }
 0x101   : > { %4285 = vmatpush3.bf16.msra.mxu1 %v4795_v55  ;;  %v4814_v55 = vld [vmem:[#allocation7 + $0x238] sm:$0xff]  }
 0x102   : > { %4286 = vmatprep.subr.bf16.mxu1 %v4798_v0 }
 0x105   : > { %4287 = vmatpush3.bf16.msra.mxu1 %v4798_v0 }
 0x106   : > { %4320 = vmatprep.subr.bf16.mxu1 %v5598_v5 }
 0x107   : > { %1415 = vmatmul.mubr.bf16.gmra.mrb[48].mxu0 %v5601_v6  ;;  %1978 = vmatmul.mubr.bf16.gmra.mrb[48].mxu1 %v5518_v24 }
 0x108   : > { %1422 = vmatprep.mubr.bf16.mxu0 %v5604_v12  ;;  %1985 = vmatprep.mubr.bf16.mxu1 %v5527_v29 }
 0x10f   : > { %1423 = vmatmul.mubr.bf16.gmra.mrb[52].mxu0 %v5613_v21  ;;  %1986 = vmatmul.mubr.bf16.gmra.mrb[52].mxu1 %v5539_v42 }
 0x110   : > { %1430 = vmatprep.mubr.bf16.mxu0 %v5616_v18  ;;  %1993 = vmatprep.mubr.bf16.mxu1 %v5547_v46 }
 0x117   : > { %1431 = vmatmul.mubr.bf16.gmra.mrb[56].mxu0 %v5623_v32  ;;  %1994 = vmatmul.mubr.bf16.gmra.mrb[56].mxu1 %v5555_v57 }
 0x118   : > { %1438 = vmatprep.mubr.bf16.mxu0 %v5626_v34  ;;  %2001 = vmatprep.mubr.bf16.mxu1 %v5558_v61 }
 0x11f   : > { %1439 = vmatmul.mubr.bf16.gmra.mrb[60].mxu0 %v5633_v26  ;;  %2002 = vmatmul.mubr.bf16.gmra.mrb[60].mxu1 %v5566_v13 }
 0x120   : > { %2009 = vmatprep.mubr.bf16.mxu1 %v5569_v16  ;;  %2604 = vmatprep.mubr.bf16.mxu0 %v5467_v35  ;;  %v4796_v35 = vld [vmem:[%s5395_s23 + $0x88] sm:$0xff]  }
 0x127   : > { %2010 = vmatmul.mubr.bf16.gmra.mrb[64].mxu1 %v5576_v22  ;;  %2605 = vmatmul.mubr.bf16.vlgmr.msra.gmra.mrb[64].mxu0 %v5479_v43  ;;  %v748_v43 = vshrl.u32 %v4787_v11, 16  ;;  %v4811_v11 = vld [vmem:[%s5395_s23 + $0xa0] ss:$0 sps:$4 sm:$0x11]  }
 0x128   : > { %2017 = vmatprep.mubr.bf16.mxu1 %v5580_v39  ;;  %2612 = vmatprep.mubr.bf16.mxu0 %v5488_v52  ;;  %v752_v52 = vshll.u32 %v4796_v35, 16 }
 0x129   : > { %4369 = vmatpush3.bf16.msra.mxu0 %v4817_v10 }
 0x12f   : > { %2018 = vmatmul.mubr.bf16.gmra.mrb[68].mxu1 %v5588_v48  ;;  %2613 = vmatmul.mubr.bf16.gmra.mrb[68].mxu0 %v5499_v1  ;;  %v750_v1 = vor.u32 %v748_v43, %v746_v31  ;;  %v772_v31 = vshrl.u32 %v4807_v58, 16 }
 0x130   : > { %2025 = vmatprep.mubr.bf16.mxu1 %v5592_v62  ;;  %2620 = vmatprep.mubr.bf16.mxu0 %v5507_v8  ;;  %v754_v8 = vrot.slane %v752_v52, 1 }
 0x131   : > { %v774_v43 = vor.u32 %v772_v31, %v770_v15 }
 0x137   : > { %2026 = vmatmul.mubr.bf16.gmra.mrb[72].mxu1 %v5601_v6  ;;  %2621 = vmatmul.mubr.bf16.gmra.mrb[72].mxu0 %v5518_v24  ;;  %v5661_v24 = vld [vmem:[%s5395_s23 + $0x90] sm:$0xff]  }
 0x138   : > { %2033 = vmatprep.mubr.bf16.mxu1 %v5604_v12  ;;  %2628 = vmatprep.mubr.bf16.mxu0 %v5527_v29  ;;  %v755_v29 = vsel %vm615_vm0, %v750_v1, %v754_v8  ;;  %v764_v7 = vshrl.u32 %v5661_v24, 16 }
 0x13f   : > { %2034 = vmatmul.mubr.bf16.gmra.mrb[76].mxu1 %v5613_v21  ;;  %2629 = vmatmul.mubr.bf16.gmra.mrb[76].mxu0 %v5539_v42  ;;  %v756_v42 = vshrl.u32 %v4796_v35, 16  ;;  %v998_v35 = vrot.slane %v4810_v25, 1 }
 0x140   : > { %2041 = vmatprep.mubr.bf16.mxu1 %v5616_v18  ;;  %2636 = vmatprep.mubr.bf16.mxu0 %v5547_v46  ;;  %v760_v46 = vshll.u32 %v5661_v24, 16 }
 0x142   : > { %v5668_v37 = vrot.slane %v760_v46, 1 }
 0x147   : > { %2042 = vmatmul.mubr.bf16.gmra.mrb[80].mxu1 %v5623_v32  ;;  %2637 = vmatmul.mubr.bf16.gmra.mrb[80].mxu0 %v5555_v57  ;;  %v758_v57 = vor.u32 %v756_v42, %v754_v8  ;;  %v4808_v8 = vld [vmem:[%s5395_s23 + $0x90] sm:$0xff]  }
 0x148   : > { %2049 = vmatprep.mubr.bf16.mxu1 %v5626_v34  ;;  %2644 = vmatprep.mubr.bf16.mxu0 %v5558_v61  ;;  %v5671_v61 = vld [vmem:[%s5395_s23 + $0x80] sm:$0xff]  }
 0x149   : > { %v5675_v40 = vsel %vm615_vm0, %v758_v57, %v5668_v37  ;;  %v5738_v57 = vsel %vm964_vm1, %v996_v38, %v998_v35 }
 0x14f   : > { %2050 = vmatmul.mubr.bf16.gmra.mrb[84].mxu1 %v5633_v26  ;;  %2645 = vmatmul.mubr.bf16.gmra.mrb[84].mxu0 %v5566_v13  ;;  %v5682_v13 = vld [vmem:[%s5395_s23 + $0x88] sm:$0xff]  }
 0x150   : > { %2057 = vmatprep.mubr.bf16.mxu1 %v755_v29  ;;  %2652 = vmatprep.mubr.bf16.mxu0 %v5569_v16  ;;  %v4802_v16 = vld [vmem:[#allocation7 + $0x208] sm:$0xff]  }
 0x157   : > { %2058 = vmatmul.mubr.bf16.gmra.mrb[88].mxu1 %v5671_v61  ;;  %2653 = vmatmul.mubr.bf16.gmra.mrb[88].mxu0 %v5576_v22  ;;  %v4803_v22 = vld [vmem:[#allocation7 + $0x210] sm:$0xff]  }
 0x158   : > { %2065 = vmatprep.mubr.bf16.mxu1 %v5675_v40  ;;  %2660 = vmatprep.mubr.bf16.mxu0 %v5580_v39  ;;  %v4804_v39 = vld [vmem:[#allocation7 + $0x218] sm:$0xff]  }
 0x15f   : > { %2066 = vmatmul.mubr.bf16.gmra.mrb[92].mxu1 %v5682_v13  ;;  %2661 = vmatmul.mubr.bf16.gmra.mrb[92].mxu0 %v5588_v48 }
 0x160   : > { %4288 = vmatprep.mubr.bf16.mxu1 %v5419_v54  ;;  %2668 = vmatprep.mubr.bf16.mxu0 %v5592_v62  ;;  %v4805_v54 = vld [vmem:[#allocation7 + $0x220] sm:$0xff]  }
 0x167   : > { %4289 = vmatmul.mubr.bf16.vlgmr.msra.gmra.mrb[0].mxu1 %v5425_v60  ;;  %2669 = vmatmul.mubr.bf16.gmra.mrb[96].mxu0 %v5601_v6  ;;  %v4806_v60 = vld [vmem:[#allocation7 + $0x228] sm:$0xff]  }
 0x168   : > { %4321 = vmatpush3.bf16.msra.mxu1 %v5598_v5  ;;  %4292 = vmatprep.mubr.bf16.mxu1 %v5431_v4 }
 0x169   : > { %2676 = vmatprep.mubr.bf16.mxu0 %v5604_v12  ;;  %4322 = vmatprep.subr.bf16.mxu1 %v4802_v16  ;;  %v766_v12 = vor.u32 %v764_v7, %v5668_v37 }
 0x16b   : > { %v771_v23 = vsel %vm615_vm0, %v766_v12, %v770_v15 }
 0x16c   : > { %4323 = vmatpush3.bf16.msra.mxu1 %v4802_v16  ;;  %v4818_v16 = vld [vmem:[#allocation9 + $0x8] sm:$0xff]  }
 0x16d   : > { %4324 = vmatprep.subr.bf16.mxu1 %v4803_v22  ;;  %4370 = vmatprep.subr.bf16.mxu0 %v4818_v16 }
 0x16e   : > { %4371 = vmatpush3.bf16.msra.mxu0 %v4818_v16 }
 0x16f   : > { %4293 = vmatmul.mubr.bf16.gmra.mrb[4].mxu1 %v5444_v14  ;;  %2677 = vmatmul.mubr.bf16.gmra.mrb[100].mxu0 %v5613_v21 }
 0x170   : > { %4296 = vmatprep.mubr.bf16.mxu1 %v5448_v19  ;;  %2684 = vmatprep.mubr.bf16.mxu0 %v5616_v18 }
 0x171   : > { %4325 = vmatpush3.bf16.msra.mxu1 %v4803_v22 }
 0x172   : > { %4326 = vmatprep.subr.bf16.mxu1 %v4804_v39 }
 0x175   : > { %4327 = vmatpush3.bf16.msra.mxu1 %v4804_v39 }
 0x176   : > { %4328 = vmatprep.subr.bf16.mxu1 %v4805_v54 }
 0x177   : > { %4297 = vmatmul.mubr.bf16.gmra.mrb[8].mxu1 %v5464_v33  ;;  %2685 = vmatmul.mubr.bf16.gmra.mrb[104].mxu0 %v5623_v32  ;;  %v776_v32 = vshll.u32 %v4811_v11, 16 }
 0x178   : > { %4300 = vmatprep.mubr.bf16.mxu1 %v5470_v36  ;;  %2692 = vmatprep.mubr.bf16.mxu0 %v5626_v34 }
 0x179   : > { %4329 = vmatpush3.bf16.msra.mxu1 %v4805_v54  ;;  %v778_v52 = vrot.slane %v776_v32, 1 }
 0x17a   : > { %4330 = vmatprep.subr.bf16.mxu1 %v4806_v60  ;;  %v3808_v45 = vpop.f32.mrb[0].mxu0 }
 0x17b   : > { %v3809_v47 = vpop.f32.mrb[1].mxu0  ;;  %v779_v37 = vsel %vm615_vm0, %v774_v43, %v778_v52 }
 0x17c   : > { %v5701_v48 = vadd.f32 %v3809_v47, %v3808_v45  ;;  %v3811_v49 = vpop.f32.mrb[2].mxu0 }
 0x17d   : > { %4331 = vmatpush3.bf16.msra.mxu1 %v4806_v60  ;;  %v3812_v51 = vpop.f32.mrb[3].mxu0 }
 0x17e   : > { %4332 = vmatprep.subr.bf16.mxu1 %v4809_v41  ;;  %v5703_v56 = vadd.f32 %v3812_v51, %v3811_v49 }
 0x17f   : > { %4301 = vmatmul.mubr.bf16.gmra.mrb[12].mxu1 %v5484_v50  ;;  %2693 = vmatmul.mubr.bf16.gmra.mrb[108].mxu0 %v5633_v26 }
 0x180   : > { %4304 = vmatprep.mubr.bf16.mxu1 %v5491_v53  ;;  %2700 = vmatprep.mubr.bf16.mxu0 %v755_v29  ;;  %v5731_v29 = vld [vmem:[%s5395_s23 + $0x90] sm:$0xff]  }
 0x181   : > { %4333 = vmatpush3.bf16.msra.mxu1 %v4809_v41 }
 0x182   : > { %4334 = vmatprep.subr.bf16.mxu1 %v4814_v55  ;;  %v3814_v59 = vpop.f32.mrb[4].mxu0 }
 0x183   : > { %v3815_v62 = vpop.f32.mrb[5].mxu0 }
 0x184   : > { %v5709_v63 = vadd.f32 %v3815_v62, %v3814_v59  ;;  %v3817_v0 = vpop.f32.mrb[6].mxu0  ;;  %v4819_v62 = vld [vmem:[#allocation9 + $0x10] sm:$0xff]  }
 0x185   : > { %4335 = vmatpush3.bf16.msra.mxu1 %v4814_v55  ;;  %v3818_v5 = vpop.f32.mrb[7].mxu0  ;;  %4372 = vmatprep.subr.bf16.mxu0 %v4819_v62 }
 0x186   : > { %v5712_v6 = vadd.f32 %v3818_v5, %v3817_v0  ;;  %4373 = vmatpush3.bf16.msra.mxu0 %v4819_v62 }
 0x187   : > { %4305 = vmatmul.mubr.bf16.gmra.mrb[16].mxu1 %v5503_v3  ;;  %2701 = vmatmul.mubr.bf16.gmra.mrb[112].mxu0 %v5671_v61 }
 0x188   : > { %4308 = vmatprep.mubr.bf16.mxu1 %v5510_v9  ;;  %2708 = vmatprep.mubr.bf16.mxu0 %v5675_v40 }
 0x18a   : > { %v3820_v17 = vpop.f32.mrb[8].mxu0 }
 0x18b   : > { %v3821_v21 = vpop.f32.mrb[9].mxu0 }
 0x18c   : > { %v5720_v18 = vadd.f32 %v3821_v21, %v3820_v17  ;;  %v3823_v20 = vpop.f32.mrb[10].mxu0  ;;  %v4820_v21 = vld [vmem:[#allocation9 + $0x18] sm:$0xff]  }
 0x18d   : > { %v3824_v34 = vpop.f32.mrb[11].mxu0  ;;  %4374 = vmatprep.subr.bf16.mxu0 %v4820_v21 }
 0x18e   : > { %v5724_v26 = vadd.f32 %v3824_v34, %v3823_v20  ;;  %4375 = vmatpush3.bf16.msra.mxu0 %v4820_v21 }
 0x18f   : > { %4309 = vmatmul.mubr.bf16.gmra.mrb[20].mxu1 %v5521_v27  ;;  %2709 = vmatmul.mubr.bf16.gmra.mrb[116].mxu0 %v5682_v13  ;;  %v1000_v13 = vrot.slane %v5731_v29, 1 }
 0x190   : > { %4312 = vmatprep.mubr.bf16.mxu1 %v5530_v30  ;;  %2716 = vmatprep.mubr.bf16.mxu0 %v771_v23 }
 0x191   : > { %v5750_v38 = vsel %vm964_vm1, %v998_v35, %v1000_v13 }
 0x192   : > { %v3826_v1 = vpop.f32.mrb[12].mxu0 }
 0x193   : > { %v3827_v24 = vpop.f32.mrb[13].mxu0 }
 0x194   : > { %v5733_v42 = vadd.f32 %v3827_v24, %v3826_v1  ;;  %v3829_v46 = vpop.f32.mrb[14].mxu0 }
 0x195   : > { %v3830_v61 = vpop.f32.mrb[15].mxu0 }
 0x196   : > { %v5741_v40 = vadd.f32 %v3830_v61, %v3829_v46 }
 0x197   : > { %4313 = vmatmul.mubr.bf16.gmra.mrb[24].mxu1 %v5544_v44  ;;  %2717 = vmatmul.mubr.bf16.gmra.mrb[120].mxu0 %v4808_v8 }
 0x198   : > { %4316 = vmatprep.mubr.bf16.mxu1 %v5738_v57  ;;  %2724 = vmatprep.mubr.bf16.mxu0 %v779_v37 }
 0x19a   : > { %v3832_v22 = vpop.f32.mrb[16].mxu0 }
 0x19b   : > { %v3833_v39 = vpop.f32.mrb[17].mxu0 }
 0x19c   : > { %v5752_v54 = vadd.f32 %v3833_v39, %v3832_v22  ;;  %v3835_v60 = vpop.f32.mrb[18].mxu0 }
 0x19d   : > { %v3836_v41 = vpop.f32.mrb[19].mxu0 }
 0x19e   : > { %v5754_v45 = vadd.f32 %v3836_v41, %v3835_v60 }
 0x19f   : > { %4317 = vmatmul.mubr.bf16.gmra.mrb[28].mxu1 %v5750_v38  ;;  %2725 = vmatmul.mubr.bf16.gmra.mrb[124].mxu0 %v4813_v28 }
 0x1a0   : > { %4336 = vmatprep.mubr.bf16.mxu1 %v5431_v4 }
 0x1a2   : > { %v3838_v47 = vpop.f32.mrb[20].mxu0 }
 0x1a3   : > { %v3839_v49 = vpop.f32.mrb[21].mxu0 }
 0x1a4   : > { %v5758_v51 = vadd.f32 %v3839_v49, %v3838_v47  ;;  %v3841_v55 = vpop.f32.mrb[22].mxu0 }
 0x1a5   : > { %v3842_v58 = vpop.f32.mrb[23].mxu0 }
 0x1a6   : > { %v5760_v59 = vadd.f32 %v3842_v58, %v3841_v55 }
 0x1a7   : > { %4337 = vmatmul.mubr.bf16.vlgmr.msra.gmra.mrb[0].mxu1 %v5444_v14 }
 0x1a8   : > { %4340 = vmatprep.mubr.bf16.mxu1 %v5448_v19 }
 0x1aa   : > { %v3844_v0 = vpop.f32.mrb[24].mxu0 }
 0x1ab   : > { %v3845_v7 = vpop.f32.mrb[25].mxu0 }
 0x1ac   : > { %v5764_v2 = vadd.f32 %v3845_v7, %v3844_v0  ;;  %v3847_v4 = vpop.f32.mrb[26].mxu0 }
 0x1ad   : > { %v3848_v5 = vpop.f32.mrb[27].mxu0 }
 0x1ae   : > { %v5766_v10 = vadd.f32 %v3848_v5, %v3847_v4  ;;  %v4815_v5 = vld [vmem:[%s5395_s23 + $0x98] sm:$0xff]  }
 0x1af   : > { %4341 = vmatmul.mubr.bf16.gmra.mrb[4].mxu1 %v5464_v33 }
 0x1b0   : > { %4344 = vmatprep.mubr.bf16.mxu1 %v5470_v36 }
 0x1b2   : > { %v3850_v12 = vpop.f32.mrb[28].mxu0 }
 0x1b3   : > { %v3851_v15 = vpop.f32.mrb[29].mxu0 }
 0x1b4   : > { %v5770_v14 = vadd.f32 %v3851_v15, %v3850_v12  ;;  %v3853_v19 = vpop.f32.mrb[30].mxu0 }
 0x1b5   : > { %v3854_v11 = vpop.f32.mrb[31].mxu0 }
 0x1b6   : > { %v5772_v17 = vadd.f32 %v3854_v11, %v3853_v19  ;;  %v1002_v19 = vrot.slane %v4815_v5, 1 }
 0x1b7   : > { %4345 = vmatmul.mubr.bf16.gmra.mrb[8].mxu1 %v5484_v50 }
 0x1b8   : > { %4348 = vmatprep.mubr.bf16.mxu1 %v5491_v53 }
 0x1ba   : > { %v3944_v20 = vpop.f32.mrb[32].mxu1  ;;  %v3856_v23 = vpop.f32.mrb[32].mxu0 }
 0x1bb   : > { %v3945_v25 = vpop.f32.mrb[33].mxu1  ;;  %v3857_v33 = vpop.f32.mrb[33].mxu0 }
 0x1bc   : > { %v3946_v36 = vadd.f32 %v3945_v25, %v3944_v20  ;;  %v3947_v31 = vpop.f32.mrb[34].mxu1  ;;  %v5776_v32 = vadd.f32 %v3857_v33, %v3856_v23  ;;  %v3859_v34 = vpop.f32.mrb[34].mxu0 }
 0x1bd   : > { %v3948_v35 = vpop.f32.mrb[35].mxu1  ;;  %v3860_v43 = vpop.f32.mrb[35].mxu0 }
 0x1be   : > { %v5779_v52 = vadd.f32 %v3946_v36, %v5701_v48  ;;  %v3949_v50 = vadd.f32 %v3948_v35, %v3947_v31  ;;  %v5781_v1 = vadd.f32 %v3860_v43, %v3859_v34  ;;  %v4816_v36 = vld [vmem:[%s5395_s23 + $0xa0] ss:$0 sps:$4 sm:$0x11]  }
 0x1bf   : > { %4349 = vmatmul.mubr.bf16.gmra.mrb[12].mxu1 %v5503_v3 }
 0x1c0   : > { %v5785_v53 = vadd.f32 %v3949_v50, %v5703_v56  ;;  %4352 = vmatprep.mubr.bf16.mxu1 %v5510_v9  ;;  %v4821_v56 = vld [vmem:[#allocation9 + $0x20] sm:$0xff]   ;;  %v4822_v50 = vld [vmem:[#allocation9 + $0x28] sm:$0xff]  }
 0x1c1   : > { %4376 = vmatprep.subr.bf16.mxu0 %v4821_v56 }
 0x1c2   : > { %v3950_v8 = vpop.f32.mrb[36].mxu1  ;;  %v3862_v24 = vpop.f32.mrb[36].mxu0  ;;  %4377 = vmatpush3.bf16.msra.mxu0 %v4821_v56 }
 0x1c3   : > { %v3951_v46 = vpop.f32.mrb[37].mxu1  ;;  %v3863_v37 = vpop.f32.mrb[37].mxu0  ;;  %4378 = vmatprep.subr.bf16.mxu0 %v4822_v50 }
 0x1c4   : > { %v3952_v61 = vadd.f32 %v3951_v46, %v3950_v8  ;;  %v3953_v16 = vpop.f32.mrb[38].mxu1  ;;  %v5788_v22 = vadd.f32 %v3863_v37, %v3862_v24  ;;  %v3865_v48 = vpop.f32.mrb[38].mxu0  ;;  %v1004_v24 = vrot.slane %v4816_v36, 1 }
 0x1c5   : > { %v3954_v28 = vpop.f32.mrb[39].mxu1  ;;  %v3866_v39 = vpop.f32.mrb[39].mxu0 }
 0x1c6   : > { %v5791_v60 = vadd.f32 %v3952_v61, %v5709_v63  ;;  %v3955_v3 = vadd.f32 %v3954_v28, %v3953_v16  ;;  %v5793_v41 = vadd.f32 %v3866_v39, %v3865_v48  ;;  %4379 = vmatpush3.bf16.msra.mxu0 %v4822_v50  ;;  %v1005_v16 = vsel %vm964_vm1, %v1002_v19, %v1004_v24 }
 0x1c7   : > { %4353 = vmatmul.mubr.bf16.gmra.mrb[16].mxu1 %v5521_v27 }
 0x1c8   : > { %v5797_v9 = vadd.f32 %v3955_v3, %v5712_v6  ;;  %4356 = vmatprep.mubr.bf16.mxu1 %v5530_v30 }
 0x1ca   : > { %v3956_v47 = vpop.f32.mrb[40].mxu1  ;;  %v3868_v49 = vpop.f32.mrb[40].mxu0 }
 0x1cb   : > { %v3957_v55 = vpop.f32.mrb[41].mxu1  ;;  %v3869_v58 = vpop.f32.mrb[41].mxu0 }
 0x1cc   : > { %v3958_v63 = vadd.f32 %v3957_v55, %v3956_v47  ;;  %v3959_v62 = vpop.f32.mrb[42].mxu1  ;;  %v5800_v0 = vadd.f32 %v3869_v58, %v3868_v49  ;;  %v3871_v7 = vpop.f32.mrb[42].mxu0 }
 0x1cd   : > { %v3960_v4 = vpop.f32.mrb[43].mxu1  ;;  %v3872_v27 = vpop.f32.mrb[43].mxu0 }
 0x1ce   : > { %v5804_v6 = vadd.f32 %v3958_v63, %v5720_v18  ;;  %v3961_v12 = vadd.f32 %v3960_v4, %v3959_v62  ;;  %v5806_v30 = vadd.f32 %v3872_v27, %v3871_v7 }
 0x1cf   : > { %4357 = vmatmul.mubr.bf16.gmra.mrb[20].mxu1 %v5544_v44  ;;  %v1003_v44 = vsel %vm964_vm1, %v1000_v13, %v1002_v19 }
 0x1d0   : > { %v5810_v15 = vadd.f32 %v3961_v12, %v5724_v26  ;;  %4360 = vmatprep.mubr.bf16.mxu1 %v5738_v57 }
 0x1d2   : > { %v3962_v11 = vpop.f32.mrb[44].mxu1  ;;  %v3874_v21 = vpop.f32.mrb[44].mxu0 }
 0x1d3   : > { %v3963_v20 = vpop.f32.mrb[45].mxu1  ;;  %v3875_v23 = vpop.f32.mrb[45].mxu0 }
 0x1d4   : > { %v3964_v25 = vadd.f32 %v3963_v20, %v3962_v11  ;;  %v3965_v33 = vpop.f32.mrb[46].mxu1  ;;  %v5814_v18 = vadd.f32 %v3875_v23, %v3874_v21  ;;  %v3877_v31 = vpop.f32.mrb[46].mxu0  ;;  %v4823_v21 = vld [vmem:[#allocation9 + $0x30] sm:$0xff]  }
 0x1d5   : > { %v3966_v34 = vpop.f32.mrb[47].mxu1  ;;  %v3878_v26 = vpop.f32.mrb[47].mxu0  ;;  %4380 = vmatprep.subr.bf16.mxu0 %v4823_v21 }
 0x1d6   : > { %v5820_v35 = vadd.f32 %v3964_v25, %v5733_v42  ;;  %v3967_v57 = vadd.f32 %v3966_v34, %v3965_v33  ;;  %v5822_v43 = vadd.f32 %v3878_v26, %v3877_v31  ;;  %4381 = vmatpush3.bf16.msra.mxu0 %v4823_v21 }
 0x1d7   : > { %4361 = vmatmul.mubr.bf16.gmra.mrb[24].mxu1 %v5750_v38 }
 0x1d8   : > { %v5826_v8 = vadd.f32 %v3967_v57, %v5741_v40  ;;  %4364 = vmatprep.mubr.bf16.mxu1 %v1003_v44 }
 0x1da   : > { %v3968_v29 = vpop.f32.mrb[48].mxu1  ;;  %v3880_v46 = vpop.f32.mrb[48].mxu0 }
 0x1db   : > { %v3969_v13 = vpop.f32.mrb[49].mxu1  ;;  %v3881_v37 = vpop.f32.mrb[49].mxu0 }
 0x1dc   : > { %v3970_v61 = vadd.f32 %v3969_v13, %v3968_v29  ;;  %v3971_v42 = vpop.f32.mrb[50].mxu1  ;;  %v5829_v48 = vadd.f32 %v3881_v37, %v3880_v46  ;;  %v3883_v28 = vpop.f32.mrb[50].mxu0 }
 0x1dd   : > { %v3972_v39 = vpop.f32.mrb[51].mxu1  ;;  %v3884_v38 = vpop.f32.mrb[51].mxu0 }
 0x1de   : > { %v5832_v40 = vadd.f32 %v3970_v61, %v5752_v54  ;;  %v3973_v3 = vadd.f32 %v3972_v39, %v3971_v42  ;;  %v5834_v56 = vadd.f32 %v3884_v38, %v3883_v28 }
 0x1df   : > { %4365 = vmatmul.mubr.bf16.gmra.mrb[28].mxu1 %v1005_v16 }
 0x1e0   : > { %v5837_v47 = vadd.f32 %v3973_v3, %v5754_v45 }
 0x1e2   : > { %v3974_v49 = vpop.f32.mrb[52].mxu1  ;;  %v3886_v55 = vpop.f32.mrb[52].mxu0 }
 0x1e3   : > { %v3975_v58 = vpop.f32.mrb[53].mxu1  ;;  %v3887_v63 = vpop.f32.mrb[53].mxu0 }
 0x1e4   : > { %v3976_v62 = vadd.f32 %v3975_v58, %v3974_v49  ;;  %v3977_v7 = vpop.f32.mrb[54].mxu1  ;;  %v5839_v4 = vadd.f32 %v3887_v63, %v3886_v55  ;;  %v3889_v5 = vpop.f32.mrb[54].mxu0  ;;  %v4824_v55 = vld [vmem:[#allocation9 + $0x38] sm:$0xff]  }
 0x1e5   : > { %v3978_v27 = vpop.f32.mrb[55].mxu1  ;;  %v3890_v12 = vpop.f32.mrb[55].mxu0  ;;  %4382 = vmatprep.subr.bf16.mxu0 %v4824_v55 }
 0x1e6   : > { %v5842_v54 = vadd.f32 %v3976_v62, %v5758_v51  ;;  %v3979_v19 = vadd.f32 %v3978_v27, %v3977_v7  ;;  %v5844_v11 = vadd.f32 %v3890_v12, %v3889_v5  ;;  %4383 = vmatpush3.bf16.msra.mxu0 %v4824_v55 }
 0x1e8   : > { %v5847_v45 = vadd.f32 %v3979_v19, %v5760_v59 }
 0x1ea   : > { %v3980_v20 = vpop.f32.mrb[56].mxu1  ;;  %v3892_v23 = vpop.f32.mrb[56].mxu0 }
 0x1eb   : > { %v3981_v25 = vpop.f32.mrb[57].mxu1  ;;  %v3893_v33 = vpop.f32.mrb[57].mxu0 }
 0x1ec   : > { %v3982_v36 = vadd.f32 %v3981_v25, %v3980_v20  ;;  %v3983_v31 = vpop.f32.mrb[58].mxu1  ;;  %v5849_v34 = vadd.f32 %v3893_v33, %v3892_v23  ;;  %v3895_v44 = vpop.f32.mrb[58].mxu0 }
 0x1ed   : > { %v3984_v51 = vpop.f32.mrb[59].mxu1  ;;  %v3896_v26 = vpop.f32.mrb[59].mxu0 }
 0x1ee   : > { %v5852_v57 = vadd.f32 %v3982_v36, %v5764_v2  ;;  %v3985_v50 = vadd.f32 %v3984_v51, %v3983_v31  ;;  %v5854_v24 = vadd.f32 %v3896_v26, %v3895_v44 }
 0x1f0   : > { %v5857_v59 = vadd.f32 %v3985_v50, %v5766_v10 }
 0x1f2   : > { %v3986_v29 = vpop.f32.mrb[60].mxu1  ;;  %v3898_v46 = vpop.f32.mrb[60].mxu0 }
 0x1f3   : > { %v3987_v13 = vpop.f32.mrb[61].mxu1  ;;  %v3899_v37 = vpop.f32.mrb[61].mxu0 }
 0x1f4   : > { %v3988_v61 = vadd.f32 %v3987_v13, %v3986_v29  ;;  %v3989_v42 = vpop.f32.mrb[62].mxu1  ;;  %v5859_v16 = vadd.f32 %v3899_v37, %v3898_v46  ;;  %v3901_v28 = vpop.f32.mrb[62].mxu0 }
 0x1f5   : > { %v3990_v39 = vpop.f32.mrb[63].mxu1  ;;  %v3902_v38 = vpop.f32.mrb[63].mxu0 }
 0x1f6   : > { %v5862_v2 = vadd.f32 %v3988_v61, %v5770_v14  ;;  %v3991_v3 = vadd.f32 %v3990_v39, %v3989_v42  ;;  %v5864_v49 = vadd.f32 %v3902_v38, %v3901_v28 }
 0x1f8   : > { %v5867_v10 = vadd.f32 %v3991_v3, %v5772_v17 }
 0x1fa   : > { %v3992_v58 = vpop.f32.mrb[64].mxu1  ;;  %v4080_v63 = vpop.f32.mrb[64].mxu0 }
 0x1fb   : > { %v3993_v62 = vpop.f32.mrb[65].mxu1  ;;  %v4081_v7 = vpop.f32.mrb[65].mxu0 }
 0x1fc   : > { %v3994_v5 = vadd.f32 %v3993_v62, %v3992_v58  ;;  %v4082_v27 = vadd.f32 %v4081_v7, %v4080_v63  ;;  %v3995_v12 = vpop.f32.mrb[66].mxu1  ;;  %v4083_v19 = vpop.f32.mrb[66].mxu0 }
 0x1fd   : > { %v3996_v21 = vpop.f32.mrb[67].mxu1  ;;  %v4084_v14 = vpop.f32.mrb[67].mxu0 }
 0x1fe   : > { %v5870_v20 = vadd.f32 %v3994_v5, %v5776_v32  ;;  %v3997_v23 = vadd.f32 %v3996_v21, %v3995_v12  ;;  %v4085_v25 = vadd.f32 %v4084_v14, %v4083_v19  ;;  %v5873_v17 = vadd.f32 %v5779_v52, %v4082_v27 }
 0x200   : > { %v5876_v33 = vadd.f32 %v3997_v23, %v5781_v1  ;;  %v5879_v36 = vadd.f32 %v5785_v53, %v4085_v25 }
 0x202   : > { %v3998_v31 = vpop.f32.mrb[68].mxu1  ;;  %v4086_v44 = vpop.f32.mrb[68].mxu0 }
 0x203   : > { %v3999_v51 = vpop.f32.mrb[69].mxu1  ;;  %v4087_v26 = vpop.f32.mrb[69].mxu0 }
 0x204   : > { %v4000_v50 = vadd.f32 %v3999_v51, %v3998_v31  ;;  %v4088_v29 = vadd.f32 %v4087_v26, %v4086_v44  ;;  %v4001_v46 = vpop.f32.mrb[70].mxu1  ;;  %v4089_v32 = vpop.f32.mrb[70].mxu0 }
 0x205   : > { %v4002_v13 = vpop.f32.mrb[71].mxu1  ;;  %v4090_v37 = vpop.f32.mrb[71].mxu0 }
 0x206   : > { %v5882_v61 = vadd.f32 %v4000_v50, %v5788_v22  ;;  %v4003_v52 = vadd.f32 %v4002_v13, %v4001_v46  ;;  %v4091_v42 = vadd.f32 %v4090_v37, %v4089_v32  ;;  %v5885_v1 = vadd.f32 %v5791_v60, %v4088_v29 }
 0x208   : > { %v5888_v53 = vadd.f32 %v4003_v52, %v5793_v41  ;;  %v5891_v28 = vadd.f32 %v5797_v9, %v4091_v42 }
 0x20a   : > { %v4004_v39 = vpop.f32.mrb[72].mxu1  ;;  %v4092_v38 = vpop.f32.mrb[72].mxu0 }
 0x20b   : > { %v4005_v3 = vpop.f32.mrb[73].mxu1  ;;  %v4093_v55 = vpop.f32.mrb[73].mxu0 }
 0x20c   : > { %v4006_v58 = vadd.f32 %v4005_v3, %v4004_v39  ;;  %v4094_v63 = vadd.f32 %v4093_v55, %v4092_v38  ;;  %v4007_v62 = vpop.f32.mrb[74].mxu1  ;;  %v4095_v22 = vpop.f32.mrb[74].mxu0 }
 0x20d   : > { %v4008_v7 = vpop.f32.mrb[75].mxu1  ;;  %v4096_v5 = vpop.f32.mrb[75].mxu0 }
 0x20e   : > { %v5894_v27 = vadd.f32 %v4006_v58, %v5800_v0  ;;  %v4009_v60 = vadd.f32 %v4008_v7, %v4007_v62  ;;  %v4097_v12 = vadd.f32 %v4096_v5, %v4095_v22  ;;  %v5897_v41 = vadd.f32 %v5804_v6, %v4094_v63 }
 0x210   : > { %v5900_v9 = vadd.f32 %v4009_v60, %v5806_v30  ;;  %v5903_v19 = vadd.f32 %v5810_v15, %v4097_v12 }
 0x212   : > { %v4010_v21 = vpop.f32.mrb[76].mxu1  ;;  %v4098_v14 = vpop.f32.mrb[76].mxu0 }
 0x213   : > { %v4011_v23 = vpop.f32.mrb[77].mxu1  ;;  %v4099_v25 = vpop.f32.mrb[77].mxu0 }
 0x214   : > { %v4012_v31 = vadd.f32 %v4011_v23, %v4010_v21  ;;  %v4100_v44 = vadd.f32 %v4099_v25, %v4098_v14  ;;  %v4013_v51 = vpop.f32.mrb[78].mxu1  ;;  %v4101_v0 = vpop.f32.mrb[78].mxu0 }
 0x215   : > { %v4014_v26 = vpop.f32.mrb[79].mxu1  ;;  %v4102_v50 = vpop.f32.mrb[79].mxu0 }
 0x216   : > { %v5906_v29 = vadd.f32 %v4012_v31, %v5814_v18  ;;  %v4015_v6 = vadd.f32 %v4014_v26, %v4013_v51  ;;  %v4103_v46 = vadd.f32 %v4102_v50, %v4101_v0  ;;  %v5909_v30 = vadd.f32 %v5820_v35, %v4100_v44 }
 0x218   : > { %v5912_v15 = vadd.f32 %v4015_v6, %v5822_v43  ;;  %v5915_v32 = vadd.f32 %v5826_v8, %v4103_v46 }
 0x21a   : > { %v4016_v13 = vpop.f32.mrb[80].mxu1  ;;  %v4104_v37 = vpop.f32.mrb[80].mxu0 }
 0x21b   : > { %v4017_v52 = vpop.f32.mrb[81].mxu1  ;;  %v4105_v42 = vpop.f32.mrb[81].mxu0 }
 0x21c   : > { %v4018_v39 = vadd.f32 %v4017_v52, %v4016_v13  ;;  %v4106_v38 = vadd.f32 %v4105_v42, %v4104_v37  ;;  %v4019_v3 = vpop.f32.mrb[82].mxu1  ;;  %v4107_v18 = vpop.f32.mrb[82].mxu0 }
 0x21d   : > { %v4020_v55 = vpop.f32.mrb[83].mxu1  ;;  %v4108_v58 = vpop.f32.mrb[83].mxu0 }
 0x21e   : > { %v5918_v63 = vadd.f32 %v4018_v39, %v5829_v48  ;;  %v4021_v35 = vadd.f32 %v4020_v55, %v4019_v3  ;;  %v4109_v62 = vadd.f32 %v4108_v58, %v4107_v18  ;;  %v5921_v43 = vadd.f32 %v5832_v40, %v4106_v38 }
 0x220   : > { %v5924_v8 = vadd.f32 %v4021_v35, %v5834_v56  ;;  %v5927_v22 = vadd.f32 %v5837_v47, %v4109_v62 }
 0x222   : > { %v4022_v7 = vpop.f32.mrb[84].mxu1  ;;  %v4110_v5 = vpop.f32.mrb[84].mxu0 }
 0x223   : > { %v4023_v60 = vpop.f32.mrb[85].mxu1  ;;  %v4111_v12 = vpop.f32.mrb[85].mxu0 }
 0x224   : > { %v4024_v21 = vadd.f32 %v4023_v60, %v4022_v7  ;;  %v4112_v14 = vadd.f32 %v4111_v12, %v4110_v5  ;;  %v4025_v23 = vpop.f32.mrb[86].mxu1  ;;  %v4113_v48 = vpop.f32.mrb[86].mxu0 }
 0x225   : > { %v4026_v25 = vpop.f32.mrb[87].mxu1  ;;  %v4114_v31 = vpop.f32.mrb[87].mxu0 }
 0x226   : > { %v5930_v44 = vadd.f32 %v4024_v21, %v5839_v4  ;;  %v4027_v40 = vadd.f32 %v4026_v25, %v4025_v23  ;;  %v4115_v51 = vadd.f32 %v4114_v31, %v4113_v48  ;;  %v5933_v56 = vadd.f32 %v5842_v54, %v4112_v14 }
 0x228   : > { %v5936_v47 = vadd.f32 %v4027_v40, %v5844_v11  ;;  %v5939_v0 = vadd.f32 %v5847_v45, %v4115_v51 }
 0x22a   : > { %v4028_v26 = vpop.f32.mrb[88].mxu1  ;;  %v4116_v50 = vpop.f32.mrb[88].mxu0 }
 0x22b   : > { %v4029_v6 = vpop.f32.mrb[89].mxu1  ;;  %v4117_v46 = vpop.f32.mrb[89].mxu0 }
 0x22c   : > { %v4030_v13 = vadd.f32 %v4029_v6, %v4028_v26  ;;  %v4118_v37 = vadd.f32 %v4117_v46, %v4116_v50  ;;  %v4031_v52 = vpop.f32.mrb[90].mxu1  ;;  %v4119_v4 = vpop.f32.mrb[90].mxu0 }
 0x22d   : > { %v4032_v42 = vpop.f32.mrb[91].mxu1  ;;  %v4120_v39 = vpop.f32.mrb[91].mxu0 }
 0x22e   : > { %v5942_v38 = vadd.f32 %v4030_v13, %v5849_v34  ;;  %v4033_v54 = vadd.f32 %v4032_v42, %v4031_v52  ;;  %v4121_v3 = vadd.f32 %v4120_v39, %v4119_v4  ;;  %v5945_v11 = vadd.f32 %v5852_v57, %v4118_v37 }
 0x230   : > { %v5948_v45 = vadd.f32 %v4033_v54, %v5854_v24  ;;  %v5951_v18 = vadd.f32 %v5857_v59, %v4121_v3 }
 0x232   : > { %v4034_v55 = vpop.f32.mrb[92].mxu1  ;;  %v4122_v58 = vpop.f32.mrb[92].mxu0 }
 0x233   : > { %v4035_v35 = vpop.f32.mrb[93].mxu1  ;;  %v4123_v62 = vpop.f32.mrb[93].mxu0 }
 0x234   : > { %v4036_v7 = vadd.f32 %v4035_v35, %v4034_v55  ;;  %v4124_v5 = vadd.f32 %v4123_v62, %v4122_v58  ;;  %v4037_v60 = vpop.f32.mrb[94].mxu1  ;;  %v4125_v34 = vpop.f32.mrb[94].mxu0 }
 0x235   : > { %v4038_v12 = vpop.f32.mrb[95].mxu1  ;;  %v4126_v21 = vpop.f32.mrb[95].mxu0 }
 0x236   : > { %v5954_v14 = vadd.f32 %v4036_v7, %v5859_v16  ;;  %v4039_v57 = vadd.f32 %v4038_v12, %v4037_v60  ;;  %v4127_v23 = vadd.f32 %v4126_v21, %v4125_v34  ;;  %v5957_v24 = vadd.f32 %v5862_v2, %v4124_v5 }
 0x238   : > { %v5960_v59 = vadd.f32 %v4039_v57, %v5864_v49  ;;  %v5963_v48 = vadd.f32 %v5867_v10, %v4127_v23 }
 0x23a   : > { %v4128_v25 = vpop.f32.mrb[96].mxu0 }
 0x23b   : > { %v4129_v31 = vpop.f32.mrb[97].mxu0 }
 0x23c   : > { %v4130_v40 = vadd.f32 %v4129_v31, %v4128_v25  ;;  %v4131_v51 = vpop.f32.mrb[98].mxu0 }
 0x23d   : > { %v4132_v26 = vpop.f32.mrb[99].mxu0 }
 0x23e   : > { %v4133_v50 = vadd.f32 %v4132_v26, %v4131_v51  ;;  %v5966_v16 = vadd.f32 %v5870_v20, %v4130_v40 }
 0x240   : > { %v5969_v6 = vadd.f32 %v5876_v33, %v4133_v50 }
 0x242   : > { %v4134_v2 = vpop.f32.mrb[100].mxu0 }
 0x243   : > { %v4135_v46 = vpop.f32.mrb[101].mxu0 }
 0x244   : > { %v4136_v13 = vadd.f32 %v4135_v46, %v4134_v2  ;;  %v4137_v49 = vpop.f32.mrb[102].mxu0 }
 0x245   : > { %v4138_v37 = vpop.f32.mrb[103].mxu0 }
 0x246   : > { %v4139_v52 = vadd.f32 %v4138_v37, %v4137_v49  ;;  %v5972_v10 = vadd.f32 %v5882_v61, %v4136_v13 }
 0x248   : > { %v5975_v4 = vadd.f32 %v5888_v53, %v4139_v52 }
 0x24a   : > { %v4140_v42 = vpop.f32.mrb[104].mxu0 }
 0x24b   : > { %v4141_v39 = vpop.f32.mrb[105].mxu0 }
 0x24c   : > { %v4142_v54 = vadd.f32 %v4141_v39, %v4140_v42  ;;  %v4143_v20 = vpop.f32.mrb[106].mxu0 }
 0x24d   : > { %v4144_v3 = vpop.f32.mrb[107].mxu0 }
 0x24e   : > { %v4145_v55 = vadd.f32 %v4144_v3, %v4143_v20  ;;  %v5978_v33 = vadd.f32 %v5894_v27, %v4142_v54 }
 0x250   : > { %v5981_v58 = vadd.f32 %v5900_v9, %v4145_v55 }
 0x252   : > { %v4146_v35 = vpop.f32.mrb[108].mxu0 }
 0x253   : > { %v4147_v62 = vpop.f32.mrb[109].mxu0 }
 0x254   : > { %v4148_v7 = vadd.f32 %v4147_v62, %v4146_v35  ;;  %v4149_v61 = vpop.f32.mrb[110].mxu0 }
 0x255   : > { %v4150_v5 = vpop.f32.mrb[111].mxu0 }
 0x256   : > { %v4151_v60 = vadd.f32 %v4150_v5, %v4149_v61  ;;  %v5984_v53 = vadd.f32 %v5906_v29, %v4148_v7 }
 0x258   : > { %v5987_v34 = vadd.f32 %v5912_v15, %v4151_v60 }
 0x25a   : > { %v4152_v12 = vpop.f32.mrb[112].mxu0 }
 0x25b   : > { %v4153_v21 = vpop.f32.mrb[113].mxu0 }
 0x25c   : > { %v4154_v57 = vadd.f32 %v4153_v21, %v4152_v12  ;;  %v4155_v27 = vpop.f32.mrb[114].mxu0 }
 0x25d   : > { %v4156_v23 = vpop.f32.mrb[115].mxu0 }
 0x25e   : > { %v4157_v25 = vadd.f32 %v4156_v23, %v4155_v27  ;;  %v5990_v9 = vadd.f32 %v5918_v63, %v4154_v57 }
 0x260   : > { %v5993_v31 = vadd.f32 %v5924_v8, %v4157_v25 }
 0x262   : > { %v4158_v40 = vpop.f32.mrb[116].mxu0 }
 0x263   : > { %v4159_v51 = vpop.f32.mrb[117].mxu0 }
 0x264   : > { %v4160_v26 = vadd.f32 %v4159_v51, %v4158_v40  ;;  %v4161_v29 = vpop.f32.mrb[118].mxu0 }
 0x265   : > { %v4162_v50 = vpop.f32.mrb[119].mxu0 }
 0x266   : > { %v4163_v2 = vadd.f32 %v4162_v50, %v4161_v29  ;;  %v5996_v15 = vadd.f32 %v5930_v44, %v4160_v26 }
 0x268   : > { %v5999_v46 = vadd.f32 %v5936_v47, %v4163_v2 }
 0x26a   : > { %v4164_v13 = vpop.f32.mrb[120].mxu0 }
 0x26b   : > { %v4165_v49 = vpop.f32.mrb[121].mxu0 }
 0x26c   : > { %v4166_v37 = vadd.f32 %v4165_v49, %v4164_v13  ;;  %v4167_v63 = vpop.f32.mrb[122].mxu0 }
 0x26d   : > { %v4168_v52 = vpop.f32.mrb[123].mxu0 }
 0x26e   : > { %v4169_v42 = vadd.f32 %v4168_v52, %v4167_v63  ;;  %v6002_v8 = vadd.f32 %v5942_v38, %v4166_v37  ;;  %v6016_v38 = vld [vmem:[%s6414_s2] ss:$0 sm:$0xff] }
 0x270   : > { %v6005_v39 = vadd.f32 %v5948_v45, %v4169_v42 }
 0x272   : > { %v4170_v54 = vpop.f32.mrb[124].mxu0 }
 0x273   : > { %v4171_v20 = vpop.f32.mrb[125].mxu0 }
 0x274   : > { %v4172_v3 = vadd.f32 %v4171_v20, %v4170_v54  ;;  %v4173_v44 = vpop.f32.mrb[126].mxu0 }
 0x275   : > { %v4174_v55 = vpop.f32.mrb[127].mxu0 }
 0x276   : > { %v4175_v35 = vadd.f32 %v4174_v55, %v4173_v44  ;;  %v6008_v47 = vadd.f32 %v5954_v14, %v4172_v3 }
 0x278   : > { %v6011_v62 = vadd.f32 %v5960_v59, %v4175_v35 }
 0x27a   : > { %v4338_v7 = vpop.f32.mrb[0].mxu1 }
 0x27b   : > { %v4418_v45 = vadd.f32 %v5885_v1, %v4338_v7  ;;  %v2767_v61 = vpop.f32.mrb[1].mxu1 }
 0x27c   : > { %v4421_v5 = vadd.f32 %v5873_v17, %v2767_v61  ;;  %v4339_v60 = vpop.f32.mrb[2].mxu1 }
 0x27d   : > { %v2999_v12 = vadd.f32 %v4418_v45, %v6016_v38  ;;  %v4424_v14 = vadd.f32 %v5891_v28, %v4339_v60  ;;  %v2770_v21 = vpop.f32.mrb[3].mxu1 }
 0x27e   : > { %v2997_v59 = vadd.f32 %v4421_v5, %v6016_v38  ;;  %v4427_v57 = vadd.f32 %v5879_v36, %v2770_v21 }
 0x27f   : > { %v3000_v27 = vadd.f32 %v4424_v14, %v6016_v38  ;;  %v3031_v25 = vmax.f32 %v2999_v12, 0.0 }
 0x280   : > { %v2998_v23 = vadd.f32 %v4427_v57, %v6016_v38  ;;  %v3029_v1 = vmax.f32 %v2997_v59, 0.0 }
 0x281   : > { %v3032_v40 = vmax.f32 %v3000_v27, 0.0 }
 0x282   : > { %v3030_v51 = vmax.f32 %v2998_v23, 0.0  ;;  %v4342_v26 = vpop.f32.mrb[4].mxu1 }
 0x283   : > { %v3062_v17 = vpack.c.bf16 %v3032_v40, %v3031_v25  ;;  %v4430_v29 = vadd.f32 %v5909_v30, %v4342_v26  ;;  %v2783_v50 = vpop.f32.mrb[5].mxu1 }
 0x284   : > { %v4433_v28 = vadd.f32 %v5897_v41, %v2783_v50  ;;  %v4343_v2 = vpop.f32.mrb[6].mxu1  ;;  %v3061_v13 = vpack.c.bf16 %v3030_v51, %v3029_v1 }
 0x285   : > { %v3003_v49 = vadd.f32 %v4430_v29, %v6016_v38  ;;  %v4436_v36 = vadd.f32 %v5915_v32, %v4343_v2  ;;  %v2786_v37 = vpop.f32.mrb[7].mxu1 }
 0x286   : > { %v3001_v63 = vadd.f32 %v4433_v28, %v6016_v38  ;;  %v4439_v52 = vadd.f32 %v5903_v19, %v2786_v37  ;;  %4384 = vmatprep.mubr.bf16.mxu0 %v3061_v13 }
 0x287   : > { %v3004_v42 = vadd.f32 %v4436_v36, %v6016_v38  ;;  %4385 = vmatmul.mubr.bf16.vlgmr.msra.gmra.mrb[128].mxu0 %v3062_v17  ;;  %v3035_v54 = vmax.f32 %v3003_v49, 0.0 }
 0x288   : > { %v3002_v30 = vadd.f32 %v4439_v52, %v6016_v38  ;;  %v3033_v41 = vmax.f32 %v3001_v63, 0.0 }
 0x289   : > { %v3036_v20 = vmax.f32 %v3004_v42, 0.0 }
 0x28a   : > { %v3034_v3 = vmax.f32 %v3002_v30, 0.0  ;;  %v4346_v44 = vpop.f32.mrb[8].mxu1 }
 0x28b   : > { %v4442_v55 = vadd.f32 %v5933_v56, %v4346_v44  ;;  %v2799_v35 = vpop.f32.mrb[9].mxu1  ;;  %v3064_v32 = vpack.c.bf16 %v3036_v20, %v3035_v54 }
 0x28c   : > { %v4445_v7 = vadd.f32 %v5921_v43, %v2799_v35  ;;  %v4347_v45 = vpop.f32.mrb[10].mxu1  ;;  %v3063_v61 = vpack.c.bf16 %v3034_v3, %v3033_v41 }
 0x28d   : > { %v3007_v19 = vadd.f32 %v4442_v55, %v6016_v38  ;;  %v4448_v5 = vadd.f32 %v5939_v0, %v4347_v45  ;;  %v2802_v60 = vpop.f32.mrb[11].mxu1 }
 0x28e   : > { %v3005_v12 = vadd.f32 %v4445_v7, %v6016_v38  ;;  %v4451_v14 = vadd.f32 %v5927_v22, %v2802_v60  ;;  %4388 = vmatprep.mubr.bf16.mxu0 %v3063_v61 }
 0x28f   : > { %v3008_v21 = vadd.f32 %v4448_v5, %v6016_v38  ;;  %4389 = vmatmul.mubr.bf16.gmra.mrb[132].mxu0 %v3064_v32  ;;  %v3039_v59 = vmax.f32 %v3007_v19, 0.0 }
 0x290   : > { %v3006_v56 = vadd.f32 %v4451_v14, %v6016_v38  ;;  %v3037_v43 = vmax.f32 %v3005_v12, 0.0 }
 0x291   : > { %v3040_v57 = vmax.f32 %v3008_v21, 0.0 }
 0x292   : > { %v3038_v27 = vmax.f32 %v3006_v56, 0.0  ;;  %v4350_v23 = vpop.f32.mrb[12].mxu1 }
 0x293   : > { %v4454_v25 = vadd.f32 %v5957_v24, %v4350_v23  ;;  %v2815_v40 = vpop.f32.mrb[13].mxu1  ;;  %v3066_v0 = vpack.c.bf16 %v3040_v57, %v3039_v59 }
 0x294   : > { %v4457_v1 = vadd.f32 %v5945_v11, %v2815_v40  ;;  %v4351_v51 = vpop.f32.mrb[14].mxu1  ;;  %v3065_v26 = vpack.c.bf16 %v3038_v27, %v3037_v43 }
 0x295   : > { %v3011_v22 = vadd.f32 %v4454_v25, %v6016_v38  ;;  %v4460_v17 = vadd.f32 %v5963_v48, %v4351_v51  ;;  %v2818_v29 = vpop.f32.mrb[15].mxu1 }
 0x296   : > { %v3009_v50 = vadd.f32 %v4457_v1, %v6016_v38  ;;  %v4463_v28 = vadd.f32 %v5951_v18, %v2818_v29  ;;  %4392 = vmatprep.mubr.bf16.mxu0 %v3065_v26 }
 0x297   : > { %v3012_v2 = vadd.f32 %v4460_v17, %v6016_v38  ;;  %4393 = vmatmul.mubr.bf16.gmra.mrb[136].mxu0 %v3066_v0  ;;  %v3043_v13 = vmax.f32 %v3011_v22, 0.0 }
 0x298   : > { %v3010_v24 = vadd.f32 %v4463_v28, %v6016_v38  ;;  %v3041_v11 = vmax.f32 %v3009_v50, 0.0 }
 0x299   : > { %v3044_v49 = vmax.f32 %v3012_v2, 0.0 }
 0x29a   : > { %v3042_v36 = vmax.f32 %v3010_v24, 0.0  ;;  %v4354_v37 = vpop.f32.mrb[16].mxu1 }
 0x29b   : > { %v4466_v63 = vadd.f32 %v5972_v10, %v4354_v37  ;;  %v2831_v52 = vpop.f32.mrb[17].mxu1  ;;  %v3068_v48 = vpack.c.bf16 %v3044_v49, %v3043_v13 }
 0x29c   : > { %v4469_v42 = vadd.f32 %v5966_v16, %v2831_v52  ;;  %v4355_v30 = vpop.f32.mrb[18].mxu1  ;;  %v3067_v54 = vpack.c.bf16 %v3042_v36, %v3041_v11 }
 0x29d   : > { %v3015_v18 = vadd.f32 %v4466_v63, %v6016_v38  ;;  %v4472_v20 = vadd.f32 %v5975_v4, %v4355_v30  ;;  %v2834_v41 = vpop.f32.mrb[19].mxu1 }
 0x29e   : > { %v3013_v3 = vadd.f32 %v4469_v42, %v6016_v38  ;;  %v4475_v44 = vadd.f32 %v5969_v6, %v2834_v41  ;;  %4396 = vmatprep.mubr.bf16.mxu0 %v3067_v54 }
 0x29f   : > { %v3016_v55 = vadd.f32 %v4472_v20, %v6016_v38  ;;  %4397 = vmatmul.mubr.bf16.gmra.mrb[140].mxu0 %v3068_v48  ;;  %v3047_v35 = vmax.f32 %v3015_v18, 0.0 }
 0x2a0   : > { %v3014_v10 = vadd.f32 %v4475_v44, %v6016_v38  ;;  %v3045_v16 = vmax.f32 %v3013_v3, 0.0 }
 0x2a1   : > { %v3048_v32 = vmax.f32 %v3016_v55, 0.0 }
 0x2a2   : > { %v3046_v7 = vmax.f32 %v3014_v10, 0.0  ;;  %v4358_v45 = vpop.f32.mrb[20].mxu1 }
 0x2a3   : > { %v4478_v61 = vadd.f32 %v5984_v53, %v4358_v45  ;;  %v2847_v19 = vpop.f32.mrb[21].mxu1  ;;  %v3070_v4 = vpack.c.bf16 %v3048_v32, %v3047_v35 }
 0x2a4   : > { %v4481_v5 = vadd.f32 %v5978_v33, %v2847_v19  ;;  %v4359_v60 = vpop.f32.mrb[22].mxu1  ;;  %v3069_v12 = vpack.c.bf16 %v3046_v7, %v3045_v16 }
 0x2a5   : > { %v3019_v6 = vadd.f32 %v4478_v61, %v6016_v38  ;;  %v4484_v14 = vadd.f32 %v5987_v34, %v4359_v60  ;;  %v2850_v21 = vpop.f32.mrb[23].mxu1 }
 0x2a6   : > { %v3017_v56 = vadd.f32 %v4481_v5, %v6016_v38  ;;  %v4487_v59 = vadd.f32 %v5981_v58, %v2850_v21  ;;  %4400 = vmatprep.mubr.bf16.mxu0 %v3069_v12 }
 0x2a7   : > { %v3020_v57 = vadd.f32 %v4484_v14, %v6016_v38  ;;  %4401 = vmatmul.mubr.bf16.gmra.mrb[144].mxu0 %v3070_v4  ;;  %v3051_v43 = vmax.f32 %v3019_v6, 0.0 }
 0x2a8   : > { %v3018_v53 = vadd.f32 %v4487_v59, %v6016_v38  ;;  %v3049_v33 = vmax.f32 %v3017_v56, 0.0 }
 0x2a9   : > { %v3052_v27 = vmax.f32 %v3020_v57, 0.0 }
 0x2aa   : > { %v3050_v23 = vmax.f32 %v3018_v53, 0.0  ;;  %v4362_v25 = vpop.f32.mrb[24].mxu1 }
 0x2ab   : > { %v4490_v40 = vadd.f32 %v5996_v15, %v4362_v25  ;;  %v2863_v0 = vpop.f32.mrb[25].mxu1  ;;  %v3072_v34 = vpack.c.bf16 %v3052_v27, %v3051_v43 }
 0x2ac   : > { %v4493_v1 = vadd.f32 %v5990_v9, %v2863_v0  ;;  %v4363_v51 = vpop.f32.mrb[26].mxu1  ;;  %v3071_v26 = vpack.c.bf16 %v3050_v23, %v3049_v33  ;;  %v3437_v33 = vlaneseq }
 0x2ad   : > { %v3023_v58 = vadd.f32 %v4490_v40, %v6016_v38  ;;  %v4496_v22 = vadd.f32 %v5999_v46, %v4363_v51  ;;  %v2866_v17 = vpop.f32.mrb[27].mxu1 }
 0x2ae   : > { %v3021_v29 = vadd.f32 %v4493_v1, %v6016_v38  ;;  %v4499_v50 = vadd.f32 %v5993_v31, %v2866_v17  ;;  %4404 = vmatprep.mubr.bf16.mxu0 %v3071_v26  ;;  %v3438_v17 = vand.u32 127, %v3437_v33 }
 0x2af   : > { %v3024_v28 = vadd.f32 %v4496_v22, %v6016_v38  ;;  %4405 = vmatmul.mubr.bf16.gmra.mrb[148].mxu0 %v3072_v34  ;;  %v3055_v2 = vmax.f32 %v3023_v58, 0.0 }
 0x2b0   : > { %v3022_v15 = vadd.f32 %v4499_v50, %v6016_v38  ;;  %v3053_v9 = vmax.f32 %v3021_v29, 0.0  ;;  %vm3439_vm2 = vcmp.ge.s32.totalorder %v3438_v17, 54  ;;  %vm3440_vm3 = vcmp.lt.s32.totalorder %v3438_v17, 63 }
 0x2b1   : > { %v3056_v24 = vmax.f32 %v3024_v28, 0.0  ;;  %vm6139_vm4 = vmand %vm3439_vm2, %vm3440_vm3 }
 0x2b2   : > { %v3054_v13 = vmax.f32 %v3022_v15, 0.0  ;;  %v4366_v49 = vpop.f32.mrb[28].mxu1 }
 0x2b3   : > { %v4502_v11 = vadd.f32 %v6008_v47, %v4366_v49  ;;  %v2879_v36 = vpop.f32.mrb[29].mxu1  ;;  %v3074_v46 = vpack.c.bf16 %v3056_v24, %v3055_v2 }
 0x2b4   : > { %v4505_v37 = vadd.f32 %v6002_v8, %v2879_v36  ;;  %v4367_v63 = vpop.f32.mrb[30].mxu1  ;;  %v3073_v52 = vpack.c.bf16 %v3054_v13, %v3053_v9 }
 0x2b5   : > { %v3027_v31 = vadd.f32 %v4502_v11, %v6016_v38  ;;  %v4508_v48 = vadd.f32 %v6011_v62, %v4367_v63  ;;  %v2882_v42 = vpop.f32.mrb[31].mxu1  ;;  %v6085_v62 = vld [vmem:[%s6416_s4] ss:$0 sm:$0xff] }
 0x2b6   : > { %v3025_v30 = vadd.f32 %v4505_v37, %v6016_v38  ;;  %v4511_v54 = vadd.f32 %v6005_v39, %v2882_v42  ;;  %4408 = vmatprep.mubr.bf16.mxu0 %v3073_v52 }
 0x2b7   : > { %v3028_v18 = vadd.f32 %v4508_v48, %v6016_v38  ;;  %4409 = vmatmul.mubr.bf16.gmra.mrb[152].mxu0 %v3074_v46  ;;  %v3059_v20 = vmax.f32 %v3027_v31, 0.0 }
 0x2b8   : > { %v3026_v47 = vadd.f32 %v4511_v54, %v6016_v38  ;;  %v3057_v8 = vmax.f32 %v3025_v30, 0.0 }
 0x2b9   : > { %v3060_v41 = vmax.f32 %v3028_v18, 0.0 }
 0x2ba   : > { %v3058_v3 = vmax.f32 %v3026_v47, 0.0 }
 0x2bb   : > { %v3076_v44 = vpack.c.bf16 %v3060_v41, %v3059_v20 }
 0x2bc   : > { %v3075_v55 = vpack.c.bf16 %v3058_v3, %v3057_v8 }
 0x2be   : > { %4412 = vmatprep.mubr.bf16.mxu0 %v3075_v55 }
 0x2bf   : > { %4413 = vmatmul.mubr.bf16.gmra.mrb[156].mxu0 %v3076_v44 }
 0x35a   : > { %v4386_v39 = vpop.f32.mrb[128].mxu0 }
 0x35b   : > { %v6088_v10 = vadd.f32 %v4386_v39, %v6085_v62  ;;  %v3182_v35 = vpop.f32.mrb[129].mxu0 }
 0x35c   : > { %v6091_v38 = vadd.f32 %v6085_v62, %v3182_v35  ;;  %v4387_v32 = vpop.f32.mrb[130].mxu0 }
 0x35d   : > { %v3313_v16 = vmul.f32 1.442695, %v6088_v10  ;;  %v6095_v7 = vadd.f32 %v4387_v32, %v6085_v62  ;;  %v3185_v45 = vpop.f32.mrb[131].mxu0 }
 0x35e   : > { %v3309_v61 = vmul.f32 1.442695, %v6091_v38  ;;  %v6099_v19 = vadd.f32 %v6085_v62, %v3185_v45 }
 0x35f   : > { %4825 = vpow2.f32 %v3313_v16  ;;  %v3315_v4 = vmul.f32 1.442695, %v6095_v7 }
 0x360   : > { %4827 = vpow2.f32 %v3309_v61  ;;  %v3311_v5 = vmul.f32 1.442695, %v6099_v19 }
 0x361   : > { %4829 = vpow2.f32 %v3315_v4 }
 0x362   : > { %4831 = vpow2.f32 %v3311_v5  ;;  %v4390_v60 = vpop.f32.mrb[132].mxu0 }
 0x363   : > { %v6104_v12 = vadd.f32 %v4390_v60, %v6085_v62  ;;  %v3198_v6 = vpop.f32.mrb[133].mxu0 }
 0x364   : > { %v6107_v14 = vadd.f32 %v6085_v62, %v3198_v6  ;;  %v4391_v21 = vpop.f32.mrb[134].mxu0 }
 0x365   : > { %v3321_v56 = vmul.f32 1.442695, %v6104_v12  ;;  %v6111_v59 = vadd.f32 %v4391_v21, %v6085_v62  ;;  %v3201_v57 = vpop.f32.mrb[135].mxu0 }
 0x366   : > { %v3317_v53 = vmul.f32 1.442695, %v6107_v14  ;;  %v6115_v43 = vadd.f32 %v6085_v62, %v3201_v57 }
 0x367   : > { %4833 = vpow2.f32 %v3321_v56  ;;  %v3323_v27 = vmul.f32 1.442695, %v6111_v59 }
 0x368   : > { %4835 = vpow2.f32 %v3317_v53  ;;  %v3319_v23 = vmul.f32 1.442695, %v6115_v43 }
 0x369   : > { %v4826_v25 = vpop.eup %4825  ;;  %4837 = vpow2.f32 %v3323_v27 }
 0x36a   : > { %v4828_v40 = vpop.eup %4827  ;;  %v3375_v0 = vadd.f32 1.0, %v4826_v25  ;;  %4839 = vpow2.f32 %v3319_v23  ;;  %v4394_v34 = vpop.f32.mrb[136].mxu0 }
 0x36b   : > { %v4830_v1 = vpop.eup %4829  ;;  %v3373_v51 = vadd.f32 1.0, %v4828_v40  ;;  %v6120_v26 = vadd.f32 %v4394_v34, %v6085_v62  ;;  %v3214_v58 = vpop.f32.mrb[137].mxu0 }
 0x36c   : > { %v4832_v22 = vpop.eup %4831  ;;  %4841 = vrcp.f32 %v3375_v0  ;;  %v3376_v29 = vadd.f32 1.0, %v4830_v1  ;;  %v6123_v50 = vadd.f32 %v6085_v62, %v3214_v58  ;;  %v4395_v28 = vpop.f32.mrb[138].mxu0 }
 0x36d   : > { %4843 = vrcp.f32 %v3373_v51  ;;  %v3374_v15 = vadd.f32 1.0, %v4832_v22  ;;  %v3329_v2 = vmul.f32 1.442695, %v6120_v26  ;;  %v6127_v24 = vadd.f32 %v4395_v28, %v6085_v62  ;;  %v3217_v9 = vpop.f32.mrb[139].mxu0 }
 0x36e   : > { %4845 = vrcp.f32 %v3376_v29  ;;  %v3325_v13 = vmul.f32 1.442695, %v6123_v50  ;;  %v6131_v49 = vadd.f32 %v6085_v62, %v3217_v9 }
 0x36f   : > { %4847 = vrcp.f32 %v3374_v15  ;;  %v3331_v11 = vmul.f32 1.442695, %v6127_v24 }
 0x370   : > { %4849 = vpow2.f32 %v3329_v2  ;;  %v3327_v36 = vmul.f32 1.442695, %v6131_v49 }
 0x371   : > { %v4834_v46 = vpop.eup %4833  ;;  %4851 = vpow2.f32 %v3325_v13 }
 0x372   : > { %v4836_v37 = vpop.eup %4835  ;;  %v3379_v63 = vadd.f32 1.0, %v4834_v46  ;;  %4853 = vpow2.f32 %v3331_v11  ;;  %v4398_v52 = vpop.f32.mrb[140].mxu0 }
 0x373   : > { %v4838_v31 = vpop.eup %4837  ;;  %v3377_v48 = vadd.f32 1.0, %v4836_v37  ;;  %4855 = vpow2.f32 %v3327_v36  ;;  %v6137_v42 = vadd.f32 %v4398_v52, %v6085_v62  ;;  %v3230_v30 = vpop.f32.mrb[141].mxu0 }
 0x374   : > { %v4840_v54 = vpop.eup %4839  ;;  %4857 = vrcp.f32 %v3379_v63  ;;  %v3380_v47 = vadd.f32 1.0, %v4838_v31  ;;  %v6144_v20 = vadd.f32 %v6085_v62, %v3230_v30  ;;  %v4399_v41 = vpop.f32.mrb[142].mxu0 }
 0x375   : > { %4859 = vrcp.f32 %v3377_v48  ;;  %v3378_v8 = vadd.f32 1.0, %v4840_v54  ;;  %v3337_v3 = vmul.f32 1.442695, %v6137_v42  ;;  %v6148_v44 = vadd.f32 %v4399_v41, %v6085_v62  ;;  %v3233_v55 = vpop.f32.mrb[143].mxu0 }
 0x376   : > { %v4842_v39 = vpop.eup %4841  ;;  %4861 = vrcp.f32 %v3380_v47  ;;  %v3333_v35 = vmul.f32 1.442695, %v6144_v20  ;;  %v6152_v32 = vadd.f32 %v6085_v62, %v3233_v55 }
 0x377   : > { %v4844_v16 = vpop.eup %4843  ;;  %v3444_v45 = vsel %vm6139_vm4, %v4842_v39, %v6088_v10  ;;  %4863 = vrcp.f32 %v3378_v8  ;;  %v3339_v61 = vmul.f32 1.442695, %v6148_v44 }
 0x378   : > { %v4846_v4 = vpop.eup %4845  ;;  %3476 = vst [vmem:[%s6158_s16 + $0x10] sm:$0xff] %v3444_v45  ;;  %v3442_v5 = vsel %vm6139_vm4, %v4844_v16, %v6091_v38  ;;  %4865 = vpow2.f32 %v3337_v3  ;;  %v3335_v60 = vmul.f32 1.442695, %v6152_v32 }
 0x379   : > { %v4848_v6 = vpop.eup %4847  ;;  %3474 = vst [vmem:[%s6158_s16] sm:$0xff] %v3442_v5  ;;  %v3445_v10 = vsel %vm6139_vm4, %v4846_v4, %v6095_v7  ;;  %4867 = vpow2.f32 %v3333_v35 }
 0x37a   : > { %v4850_v21 = vpop.eup %4849  ;;  %3477 = vst [vmem:[%s6158_s16 + $0x18] sm:$0xff] %v3445_v10  ;;  %v3443_v56 = vsel %vm6139_vm4, %v4848_v6, %v6099_v19  ;;  %4869 = vpow2.f32 %v3339_v61  ;;  %v4402_v57 = vpop.f32.mrb[144].mxu0 }
 0x37b   : > { %v4852_v53 = vpop.eup %4851  ;;  %3475 = vst [vmem:[%s6158_s16 + $0x8] sm:$0xff] %v3443_v56  ;;  %v3383_v38 = vadd.f32 1.0, %v4850_v21  ;;  %4871 = vpow2.f32 %v3335_v60  ;;  %v6175_v27 = vadd.f32 %v4402_v57, %v6085_v62  ;;  %v3246_v33 = vpop.f32.mrb[145].mxu0 }
 0x37c   : > { %v4854_v23 = vpop.eup %4853  ;;  %v3381_v25 = vadd.f32 1.0, %v4852_v53  ;;  %v6178_v7 = vadd.f32 %v6085_v62, %v3246_v33  ;;  %v4403_v40 = vpop.f32.mrb[146].mxu0 }
 0x37d   : > { %v4856_v0 = vpop.eup %4855  ;;  %4873 = vrcp.f32 %v3383_v38  ;;  %v3384_v19 = vadd.f32 1.0, %v4854_v23  ;;  %v3345_v34 = vmul.f32 1.442695, %v6175_v27  ;;  %v6182_v1 = vadd.f32 %v4403_v40, %v6085_v62  ;;  %v3249_v51 = vpop.f32.mrb[147].mxu0 }
 0x37e   : > { %v4858_v58 = vpop.eup %4857  ;;  %4875 = vrcp.f32 %v3381_v25  ;;  %v3382_v22 = vadd.f32 1.0, %v4856_v0  ;;  %v3341_v17 = vmul.f32 1.442695, %v6178_v7  ;;  %v6186_v29 = vadd.f32 %v6085_v62, %v3249_v51 }
 0x37f   : > { %v4860_v28 = vpop.eup %4859  ;;  %v3448_v15 = vsel %vm6139_vm4, %v4858_v58, %v6104_v12  ;;  %4877 = vrcp.f32 %v3384_v19  ;;  %v3347_v2 = vmul.f32 1.442695, %v6182_v1 }
 0x380   : > { %v4862_v9 = vpop.eup %4861  ;;  %3480 = vst [vmem:[%s6158_s16 + $0x30] sm:$0xff] %v3448_v15  ;;  %v3446_v13 = vsel %vm6139_vm4, %v4860_v28, %v6107_v14  ;;  %4879 = vrcp.f32 %v3382_v22  ;;  %v3343_v11 = vmul.f32 1.442695, %v6186_v29 }
 0x381   : > { %v4864_v36 = vpop.eup %4863  ;;  %3478 = vst [vmem:[%s6158_s16 + $0x20] sm:$0xff] %v3446_v13  ;;  %v3449_v46 = vsel %vm6139_vm4, %v4862_v9, %v6111_v59  ;;  %4881 = vpow2.f32 %v3345_v34 }
 0x382   : > { %v4866_v12 = vpop.eup %4865  ;;  %3481 = vst [vmem:[%s6158_s16 + $0x38] sm:$0xff] %v3449_v46  ;;  %v3447_v37 = vsel %vm6139_vm4, %v4864_v36, %v6115_v43  ;;  %4883 = vpow2.f32 %v3341_v17  ;;  %v4406_v63 = vpop.f32.mrb[148].mxu0 }
 0x383   : > { %v4868_v52 = vpop.eup %4867  ;;  %3479 = vst [vmem:[%s6158_s16 + $0x28] sm:$0xff] %v3447_v37  ;;  %v3387_v14 = vadd.f32 1.0, %v4866_v12  ;;  %4885 = vpow2.f32 %v3347_v2  ;;  %v6207_v31 = vadd.f32 %v4406_v63, %v6085_v62  ;;  %v3262_v48 = vpop.f32.mrb[149].mxu0 }
 0x384   : > { %v4870_v30 = vpop.eup %4869  ;;  %v3385_v54 = vadd.f32 1.0, %v4868_v52  ;;  %4887 = vpow2.f32 %v3343_v11  ;;  %v6210_v59 = vadd.f32 %v6085_v62, %v3262_v48  ;;  %v4407_v47 = vpop.f32.mrb[150].mxu0 }
 0x385   : > { %v4872_v41 = vpop.eup %4871  ;;  %4889 = vrcp.f32 %v3387_v14  ;;  %v3388_v43 = vadd.f32 1.0, %v4870_v30  ;;  %v3353_v8 = vmul.f32 1.442695, %v6207_v31  ;;  %v6214_v3 = vadd.f32 %v4407_v47, %v6085_v62  ;;  %v3265_v55 = vpop.f32.mrb[151].mxu0 }
 0x386   : > { %4891 = vrcp.f32 %v3385_v54  ;;  %v3386_v39 = vadd.f32 1.0, %v4872_v41  ;;  %v3349_v35 = vmul.f32 1.442695, %v6210_v59  ;;  %v6218_v16 = vadd.f32 %v6085_v62, %v3265_v55 }
 0x387   : > { %v4874_v45 = vpop.eup %4873  ;;  %4893 = vrcp.f32 %v3388_v43  ;;  %v3355_v61 = vmul.f32 1.442695, %v6214_v3 }
 0x388   : > { %v4876_v4 = vpop.eup %4875  ;;  %v3452_v5 = vsel %vm6139_vm4, %v4874_v45, %v6120_v26  ;;  %4895 = vrcp.f32 %v3386_v39  ;;  %v3351_v60 = vmul.f32 1.442695, %v6218_v16 }
 0x389   : > { %v4878_v6 = vpop.eup %4877  ;;  %3484 = vst [vmem:[%s6158_s16 + $0x50] sm:$0xff] %v3452_v5  ;;  %v3450_v10 = vsel %vm6139_vm4, %v4876_v4, %v6123_v50  ;;  %4897 = vpow2.f32 %v3353_v8 }
 0x38a   : > { %v4880_v21 = vpop.eup %4879  ;;  %3482 = vst [vmem:[%s6158_s16 + $0x40] sm:$0xff] %v3450_v10  ;;  %v3453_v56 = vsel %vm6139_vm4, %v4878_v6, %v6127_v24  ;;  %4899 = vpow2.f32 %v3349_v35  ;;  %v4410_v57 = vpop.f32.mrb[152].mxu0 }
 0x38b   : > { %v4882_v26 = vpop.eup %4881  ;;  %3485 = vst [vmem:[%s6158_s16 + $0x58] sm:$0xff] %v3453_v56  ;;  %v3451_v53 = vsel %vm6139_vm4, %v4880_v21, %v6131_v49  ;;  %4901 = vpow2.f32 %v3355_v61  ;;  %v6238_v38 = vadd.f32 %v4410_v57, %v6085_v62  ;;  %v3278_v50 = vpop.f32.mrb[153].mxu0 }
 0x38c   : > { %v4884_v33 = vpop.eup %4883  ;;  %3483 = vst [vmem:[%s6158_s16 + $0x48] sm:$0xff] %v3451_v53  ;;  %v3391_v23 = vadd.f32 1.0, %v4882_v26  ;;  %4903 = vpow2.f32 %v3351_v60  ;;  %v6242_v25 = vadd.f32 %v6085_v62, %v3278_v50  ;;  %v4411_v24 = vpop.f32.mrb[154].mxu0 }
 0x38d   : > { %v4886_v40 = vpop.eup %4885  ;;  %v3389_v0 = vadd.f32 1.0, %v4884_v33  ;;  %v6245_v19 = vadd.f32 %v4411_v24, %v6085_v62  ;;  %v3281_v49 = vpop.f32.mrb[155].mxu0  ;;  %v3361_v58 = vmul.f32 1.442695, %v6238_v38 }
 0x38e   : > { %v4888_v34 = vpop.eup %4887  ;;  %4905 = vrcp.f32 %v3391_v23  ;;  %v3392_v51 = vadd.f32 1.0, %v4886_v40  ;;  %v6249_v22 = vadd.f32 %v6085_v62, %v3281_v49  ;;  %v3357_v15 = vmul.f32 1.442695, %v6242_v25 }
 0x38f   : > { %v4890_v17 = vpop.eup %4889  ;;  %4907 = vrcp.f32 %v3389_v0  ;;  %v3390_v28 = vadd.f32 1.0, %v4888_v34  ;;  %v3363_v13 = vmul.f32 1.442695, %v6245_v19 }
 0x390   : > { %v4892_v2 = vpop.eup %4891  ;;  %v3456_v9 = vsel %vm6139_vm4, %v4890_v17, %v6137_v42  ;;  %4909 = vrcp.f32 %v3392_v51  ;;  %v3359_v46 = vmul.f32 1.442695, %v6249_v22 }
 0x391   : > { %v4894_v11 = vpop.eup %4893  ;;  %3488 = vst [vmem:[%s6158_s16 + $0x70] sm:$0xff] %v3456_v9  ;;  %v3454_v36 = vsel %vm6139_vm4, %v4892_v2, %v6144_v20  ;;  %4911 = vrcp.f32 %v3390_v28 }
 0x392   : > { %v4896_v12 = vpop.eup %4895  ;;  %3486 = vst [vmem:[%s6158_s16 + $0x60] sm:$0xff] %v3454_v36  ;;  %v3457_v37 = vsel %vm6139_vm4, %v4894_v11, %v6148_v44  ;;  %4913 = vpow2.f32 %v3361_v58  ;;  %v4414_v42 = vpop.f32.mrb[156].mxu0 }
 0x393   : > { %v4898_v63 = vpop.eup %4897  ;;  %3489 = vst [vmem:[%s6158_s16 + $0x78] sm:$0xff] %v3457_v37  ;;  %v3455_v52 = vsel %vm6139_vm4, %v4896_v12, %v6152_v32  ;;  %4915 = vpow2.f32 %v3357_v15  ;;  %v6270_v20 = vadd.f32 %v4414_v42, %v6085_v62  ;;  %v3294_v14 = vpop.f32.mrb[157].mxu0 }
 0x394   : > { %v4900_v48 = vpop.eup %4899  ;;  %3487 = vst [vmem:[%s6158_s16 + $0x68] sm:$0xff] %v3455_v52  ;;  %v3395_v30 = vadd.f32 1.0, %v4898_v63  ;;  %4917 = vpow2.f32 %v3363_v13  ;;  %v6274_v54 = vadd.f32 %v6085_v62, %v3294_v14  ;;  %v4415_v44 = vpop.f32.mrb[158].mxu0 }
 0x395   : > { %v4902_v47 = vpop.eup %4901  ;;  %v3393_v41 = vadd.f32 1.0, %v4900_v48  ;;  %4919 = vpow2.f32 %v3359_v46  ;;  %v6277_v43 = vadd.f32 %v4415_v44, %v6085_v62  ;;  %v3297_v32 = vpop.f32.mrb[159].mxu0  ;;  %v3369_v39 = vmul.f32 1.442695, %v6270_v20 }
 0x396   : > { %v4904_v8 = vpop.eup %4903  ;;  %4921 = vrcp.f32 %v3395_v30  ;;  %v3396_v55 = vadd.f32 1.0, %v4902_v47  ;;  %v6281_v35 = vadd.f32 %v6085_v62, %v3297_v32  ;;  %v3365_v61 = vmul.f32 1.442695, %v6274_v54 }
 0x397   : > { %4923 = vrcp.f32 %v3393_v41  ;;  %v3394_v45 = vadd.f32 1.0, %v4904_v8  ;;  %v3371_v5 = vmul.f32 1.442695, %v6277_v43 }
 0x398   : > { %v4906_v4 = vpop.eup %4905  ;;  %4925 = vrcp.f32 %v3396_v55  ;;  %v3367_v62 = vmul.f32 1.442695, %v6281_v35 }
 0x399   : > { %v4908_v60 = vpop.eup %4907  ;;  %v3460_v6 = vsel %vm6139_vm4, %v4906_v4, %v6175_v27  ;;  %4927 = vrcp.f32 %v3394_v45 }
 0x39a   : > { %v4910_v10 = vpop.eup %4909  ;;  %3492 = vst [vmem:[%s6158_s16 + $0x90] sm:$0xff] %v3460_v6  ;;  %v3458_v21 = vsel %vm6139_vm4, %v4908_v60, %v6178_v7  ;;  %4929 = vpow2.f32 %v3369_v39 }
 0x39b   : > { %v4912_v56 = vpop.eup %4911  ;;  %3490 = vst [vmem:[%s6158_s16 + $0x80] sm:$0xff] %v3458_v21  ;;  %v3461_v57 = vsel %vm6139_vm4, %v4910_v10, %v6182_v1  ;;  %4931 = vpow2.f32 %v3365_v61 }
 0x39c   : > { %v4914_v26 = vpop.eup %4913  ;;  %3493 = vst [vmem:[%s6158_s16 + $0x98] sm:$0xff] %v3461_v57  ;;  %v3459_v27 = vsel %vm6139_vm4, %v4912_v56, %v6186_v29  ;;  %4933 = vpow2.f32 %v3371_v5 }
 0x39d   : > { %v4916_v53 = vpop.eup %4915  ;;  %3491 = vst [vmem:[%s6158_s16 + $0x88] sm:$0xff] %v3459_v27  ;;  %v3399_v50 = vadd.f32 1.0, %v4914_v26  ;;  %4935 = vpow2.f32 %v3367_v62 }
 0x39e   : > { %v4918_v7 = vpop.eup %4917  ;;  %v3397_v33 = vadd.f32 1.0, %v4916_v53 }
 0x39f   : > { %v4920_v23 = vpop.eup %4919  ;;  %4937 = vrcp.f32 %v3399_v50  ;;  %v3400_v1 = vadd.f32 1.0, %v4918_v7 }
 0x3a0   : > { %v4922_v24 = vpop.eup %4921  ;;  %4939 = vrcp.f32 %v3397_v33  ;;  %v3398_v40 = vadd.f32 1.0, %v4920_v23 }
 0x3a1   : > { %v4924_v0 = vpop.eup %4923  ;;  %v3464_v29 = vsel %vm6139_vm4, %v4922_v24, %v6207_v31  ;;  %4941 = vrcp.f32 %v3400_v1 }
 0x3a2   : > { %v4926_v49 = vpop.eup %4925  ;;  %3496 = vst [vmem:[%s6158_s16 + $0xb0] sm:$0xff] %v3464_v29  ;;  %v3462_v34 = vsel %vm6139_vm4, %v4924_v0, %v6210_v59  ;;  %4943 = vrcp.f32 %v3398_v40 }
 0x3a3   : > { %v4928_v51 = vpop.eup %4927  ;;  %3494 = vst [vmem:[%s6158_s16 + $0xa0] sm:$0xff] %v3462_v34  ;;  %v3465_v58 = vsel %vm6139_vm4, %v4926_v49, %v6214_v3 }
 0x3a4   : > { %v4930_v17 = vpop.eup %4929  ;;  %3497 = vst [vmem:[%s6158_s16 + $0xb8] sm:$0xff] %v3465_v58  ;;  %v3463_v31 = vsel %vm6139_vm4, %v4928_v51, %v6218_v16 }
 0x3a5   : > { %v4932_v28 = vpop.eup %4931  ;;  %3495 = vst [vmem:[%s6158_s16 + $0xa8] sm:$0xff] %v3463_v31  ;;  %v3403_v15 = vadd.f32 1.0, %v4930_v17 }
 0x3a6   : > { %v4934_v59 = vpop.eup %4933  ;;  %v3401_v2 = vadd.f32 1.0, %v4932_v28 }
 0x3a7   : > { %v4936_v9 = vpop.eup %4935  ;;  %4945 = vrcp.f32 %v3403_v15  ;;  %v3404_v13 = vadd.f32 1.0, %v4934_v59 }
 0x3a8   : > { %4947 = vrcp.f32 %v3401_v2  ;;  %v3402_v3 = vadd.f32 1.0, %v4936_v9 }
 0x3a9   : > { %v4938_v11 = vpop.eup %4937  ;;  %4949 = vrcp.f32 %v3404_v13 }
 0x3aa   : > { %v4940_v36 = vpop.eup %4939  ;;  %v3468_v16 = vsel %vm6139_vm4, %v4938_v11, %v6238_v38  ;;  %4951 = vrcp.f32 %v3402_v3 }
 0x3ab   : > { %v4942_v46 = vpop.eup %4941  ;;  %3500 = vst [vmem:[%s6158_s16 + $0xd0] sm:$0xff] %v3468_v16  ;;  %v3466_v12 = vsel %vm6139_vm4, %v4940_v36, %v6242_v25 }
 0x3ac   : > { %v4944_v37 = vpop.eup %4943  ;;  %3498 = vst [vmem:[%s6158_s16 + $0xc0] sm:$0xff] %v3466_v12  ;;  %v3469_v42 = vsel %vm6139_vm4, %v4942_v46, %v6245_v19 }
 0x3ad   : > { %3501 = vst [vmem:[%s6158_s16 + $0xd8] sm:$0xff] %v3469_v42  ;;  %v3467_v38 = vsel %vm6139_vm4, %v4944_v37, %v6249_v22 }
 0x3ae   : > { %3499 = vst [vmem:[%s6158_s16 + $0xc8] sm:$0xff] %v3467_v38 }
 0x3b1   : > { %v4946_v25 = vpop.eup %4945 }
 0x3b2   : > { %v4948_v63 = vpop.eup %4947  ;;  %v3472_v19 = vsel %vm6139_vm4, %v4946_v25, %v6270_v20 }
 0x3b3   : > { %v4950_v52 = vpop.eup %4949  ;;  %3504 = vst [vmem:[%s6158_s16 + $0xf0] sm:$0xff] %v3472_v19  ;;  %v3470_v22 = vsel %vm6139_vm4, %v4948_v63, %v6274_v54 }
 0x3b4   : > { %v4952_v14 = vpop.eup %4951  ;;  %3502 = vst [vmem:[%s6158_s16 + $0xe0] sm:$0xff] %v3470_v22  ;;  %v3473_v20 = vsel %vm6139_vm4, %v4950_v52, %v6277_v43 }
 0x3b5   : > { %3505 = vst [vmem:[%s6158_s16 + $0xf8] sm:$0xff] %v3473_v20  ;;  %v3471_v48 = vsel %vm6139_vm4, %v4952_v14, %v6281_v35 }
 0x3b6   : > { %3503 = vst [vmem:[%s6158_s16 + $0xe8] sm:$0xff] %v3471_v48 }
 0x3b7   : > { %5052 = shalt.err (!%p5049_p7)
}
 0x3b8   : > { %s5053_s23 = scalar_lea.hbm %s6347_s8, 4096  ;;  %s5057_s7 = scalar_lea.hbm %s6417_s5, 16384 }
 0x3b9   : > { %p5054_p12 = scmp.ne.s32.totalorder %s6347_s8, %s5053_s23  ;;  %p5058_p5 = scmp.lt.u32.totalorder %s6347_s8, %s6417_s5 }
 0x3ba   : > { %p5059_p9 = scmp.lt.u32.totalorder %s5057_s7, %s5053_s23  ;;  %p5061_p4 = scmp.lt.u32.totalorder %s5053_s23, %s6347_s8 }
 0x3bb   : > { %p5055_p1 = pnand %p5054_p12, %p5329_p8 }
 0x3bc   : > { %p5060_p0 = por %p5059_p9, %p5058_p5 }
 0x3bd   : > { %p5056_p2 = pneg %p5055_p1 }
 0x3be   : > { %p5062_p10 = por %p5061_p4, %p5060_p0 }
 0x3c0   : > { %p5063_p6 = pnand %p5062_p10, %p5056_p2 }
 0x3c2   : > { %5066 = shalt.err (!%p5063_p6)
}
 0x3c3   : > { %s5149_s16 = smov 128   ;;  %s5150_s11 = smov 8  }
 0x3c4   : > { %4590 = dma.vmem_to_hbm [thread:$0]  (%p5329_p8), %s6349_s14, 4096, %s6347_s8, %s3507_s9, %s5149_s16, %s5149_s16, %s5150_s11  }
 0x3c5 PF: > { %s6455_s10 = sld [smem:[#allocation14_spill]]  ;;  %s6456_s21 = sld [smem:[#allocation16_spill]] }
 0x3c6   : > { %p4612_p11 = scmp.ge.s32.totalorder %s5141_s25, 2 }
 0x3cb   : > { %s3537_s22 = sand.u32 1, %s6455_s10   ;;  %p6457_p13 = scmp.ne.s32.totalorder %s6456_s21, 0 }
 0x3cc   : > { %s3538_s26 = scalar_lea.sflag [#allocation6], %s3537_s22 }
 0x3cd   : > { %p4604_p3 = pnand %p4612_p11, %p6457_p13 }
 0x3cf   : > { %5108 = dma.done.wait (!%p4604_p3), %s3538_s26, 4096  }
 0x3d0   : > { %5110 = vsyncadd (!%p4604_p3), %s3538_s26, 4294963200  ;;  %s22_s25 = sadd.s32 1, %s5141_s25   ;;  %s6458_s21 = sld [smem:[#allocation15_spill]] }
 0x3d1   : > { %p19_p7 = scmp.ge.s32.totalorder %s22_s25, 6   ;;  %s6459_s23 = sld [smem:[#allocation17_spill]] }
 0x3d2   : > { %s6460_s12 = sld [smem:[#allocation18_spill]]  ;;  %s6461_s18 = smov %s5117_s19 }
 0x3d3   : > { %s6462_s19 = smov %s5121_s20  ;;  %s6463_s20 = smov %s5348_s1 }
 0x3d4   : > { %s6464_s22 = smov %s5137_s24  ;;  %21 = sbr.rel (!%p19_p7) target bundleno = 11 (0xb), region = 95 }
 0x3d8   : > { %s6465_s24 = smov %s6460_s12 }
 0x3db   :  { %3543 = vsyncpa [#allocation5], 1 }
 0x3dc   :  { %3545 = vsyncpa [#allocation5 + $0x1], 1 }
 0x3dd   :  { %3546 = vsyncpa [#allocation8], 1 }
 0x3de   :  { %3547 = vsyncpa [#allocation6], 1 }
 0x3df   :  { %3549 = vsyncpa [#allocation6 + $0x1], 1 }

</bundles_post_ra>
